<compile_context>
chip_gen: v6e
topology: v6e:2x2x1
jax: 0.10.0
libtpu: 0.0.40
codegen_flags: <defaults>
</compile_context>

<pallas_src>
import functools

import jax
import jax.numpy as jnp
from jax.experimental import pallas as pl
from jax.experimental.pallas import tpu as pltpu

DIM_HIDDEN = 128
LAYERS = 4          # 1 input layer + (LAYERS-1) hidden layers, as in the PyTorch module
OUT_DIM = 2


def _softplus(z):
    # Matches torch.nn.Softplus(beta=1.0, threshold=20): identity for z > 20.
    return jnp.where(z > 20.0, z, jnp.log1p(jnp.exp(jnp.minimum(z, 20.0))))


def mlp_kernel(x_ref,
               w0_ref, b0_ref,
               w1_ref, b1_ref,
               w2_ref, b2_ref,
               w3_ref, b3_ref,
               wo_ref, bo_ref,
               o_ref,
               *, compute_dtype):
    # Feature-major layout: activations are (DIM_HIDDEN, tile_n), batch on lanes.
    x = x_ref[...]                                              # (1, tile_n) f32

    # Layer 0: contraction dim is 1 -> outer-product broadcast on the VPU.
    # (DIM_HIDDEN, 1) * (1, tile_n) + (DIM_HIDDEN, 1)  ->  (DIM_HIDDEN, tile_n)
    z = w0_ref[...] * x + b0_ref[...]
    h = jnp.tanh(z.astype(compute_dtype))

    # Hidden layers on the MXU (static unroll, LAYERS-1 = 3 layers).
    # f32 accumulation; tanh in compute_dtype (bf16 on v6e/v7x halves EUP work).
    for w_ref, b_ref in ((w1_ref, b1_ref), (w2_ref, b2_ref), (w3_ref, b3_ref)):
        z = jnp.dot(w_ref[...], h, preferred_element_type=jnp.float32) + b_ref[...]
        h = jnp.tanh(z.astype(compute_dtype))

    # Output head + Softplus on the lane-dense (OUT_DIM, tile_n) slab, single unmasked store.
    z = jnp.dot(wo_ref[...], h, preferred_element_type=jnp.float32) + bo_ref[...]
    o_ref[...] = _softplus(z)


def init_params(key, dim_hidden=DIM_HIDDEN, layers=LAYERS, out_dim=OUT_DIM):
    """Deterministic init mimicking torch.nn.Linear default: U(-1/sqrt(fan_in), 1/sqrt(fan_in))."""
    params = {}
    dims = [1] + [dim_hidden] * layers + [out_dim]
    keys = jax.random.split(key, 2 * (len(dims) - 1))
    for li in range(len(dims) - 1):
        fan_in, fan_out = dims[li], dims[li + 1]
        bound = 1.0 / jnp.sqrt(jnp.float32(fan_in))
        w = jax.random.uniform(keys[2 * li], (fan_in, fan_out),
                               minval=-bound, maxval=bound, dtype=jnp.float32)
        b = jax.random.uniform(keys[2 * li + 1], (1, fan_out),
                               minval=-bound, maxval=bound, dtype=jnp.float32)
        params[f"w{li}"] = w
        params[f"b{li}"] = b
    return params


def _supports_bf16_eup():
    """bf16 VPU/EUP exists on v6e/v7x; v4/v5 parts do transcendentals in f32 only."""
    try:
        kind = jax.devices()[0].device_kind.lower()
    except Exception:
        return False
    return ("v6" in kind) or ("v7" in kind) or ("7x" in kind)


@functools.partial(jax.jit, static_argnames=("tile_n", "compute_dtype"))
def nn_forward(x, params, tile_n=None, compute_dtype=jnp.float32):
    """x: (N, 1) float32 -> (N, 2) float32. N is padded internally to a multiple of tile_n."""
    n = x.shape[0]
    if tile_n is None:
        # >=2 (here 4) row-tiles for small batches so v7x shards them across both TCs;
        # larger tiles for big batches to amortize per-grid-step pipeline overhead.
        tile_n = 256 if n <= 2048 else 1024
    num_tiles = pl.cdiv(n, tile_n)
    n_pad = num_tiles * tile_n

    if n_pad != n:
        # Zero-pad the batch; padded rows produce throwaway values sliced off below.
        x = jnp.pad(x, ((0, n_pad - n), (0, 0)))
    # (n_pad, 1) -> (1, n_pad): move the batch onto the lane axis (free reshape in HBM).
    x_row = x.reshape(1, n_pad)

    # Pre-transpose weights for the feature-major kernel; cast the MXU operands to
    # compute_dtype.  ~260 KiB of work per call: negligible, could be hoisted entirely.
    w0 = params["w0"].reshape(DIM_HIDDEN, 1)            # (1,128) -> (128,1)
    b0 = params["b0"].reshape(DIM_HIDDEN, 1)
    hidden = []
    for li in range(1, LAYERS):
        hidden.append(params[f"w{li}"].T.astype(compute_dtype))   # (128,128)
        hidden.append(params[f"b{li}"].reshape(DIM_HIDDEN, 1))    # (128,1), f32
    wo = params[f"w{LAYERS}"].T.astype(compute_dtype)    # (2,128)
    bo = params[f"b{LAYERS}"].reshape(OUT_DIM, 1)        # (2,1)

    # Weights/biases have constant index_maps -> fetched once, VMEM-resident.
    full = lambda shape: pl.BlockSpec(shape, lambda i: (0, 0))
    in_specs = [
        pl.BlockSpec((1, tile_n), lambda i: (0, i)),               # x tile (batch on lanes)
        full((DIM_HIDDEN, 1)), full((DIM_HIDDEN, 1)),              # w0^T, b0^T
        full((DIM_HIDDEN, DIM_HIDDEN)), full((DIM_HIDDEN, 1)),     # w1^T, b1^T
        full((DIM_HIDDEN, DIM_HIDDEN)), full((DIM_HIDDEN, 1)),     # w2^T, b2^T
        full((DIM_HIDDEN, DIM_HIDDEN)), full((DIM_HIDDEN, 1)),     # w3^T, b3^T
        full((OUT_DIM, DIM_HIDDEN)), full((OUT_DIM, 1)),           # w_out^T, b_out^T
    ]
    out_specs = pl.BlockSpec((OUT_DIM, tile_n), lambda i: (0, i))  # lane-dense output slab

    out_t = pl.pallas_call(
        functools.partial(mlp_kernel, compute_dtype=compute_dtype),
        out_shape=jax.ShapeDtypeStruct((OUT_DIM, n_pad), jnp.float32),
        grid=(num_tiles,),
        in_specs=in_specs,
        out_specs=out_specs,
        compiler_params=pltpu.CompilerParams(
            dimension_semantics=("parallel",)),    # lets v7x shard row-tiles across its 2 TCs
    )(x_row, w0, b0, *hidden, wo, bo)

    # (2, n_pad) -> (n, 2): tiny transpose in the wrapper, not in the kernel.
    return out_t[:, :n].T


def nn_forward_ref(x, params):
    """Pure-JAX reference of the same forward pass."""
    h = jnp.tanh(x @ params["w0"] + params["b0"])
    for li in range(1, LAYERS):
        h = jnp.tanh(h @ params[f"w{li}"] + params[f"b{li}"])
    z = h @ params[f"w{LAYERS}"] + params[f"b{LAYERS}"]
    return _softplus(z)


if __name__ == "__main__":
    key = jax.random.PRNGKey(0)
    k_params, k_x = jax.random.split(key)

    params = init_params(k_params)

    # Batch of scalar inputs, shape (N, 1) — matches Linear(1, ...) input convention.
    # N is deliberately NOT a multiple of tile_n to exercise the padding path; the
    # auto-chosen tile_n=256 gives a 4-step "parallel" grid (keeps both v7x TCs busy).
    N = 1000
    x = jax.random.uniform(k_x, (N, 1), minval=-2.0, maxval=2.0, dtype=jnp.float32)

    ref = nn_forward_ref(x, params)

    # f32 path: exact check (valid on every TPU generation, incl. v5e).
    out_f32 = jax.block_until_ready(nn_forward(x, params, compute_dtype=jnp.float32))
    assert out_f32.shape == (N, 2)
    assert jnp.allclose(out_f32, ref, atol=2e-5, rtol=1e-5), "f32 Pallas output mismatch"

    # Generation-aware fast path: bf16 tanh/matmul operands on v6e/v7x, f32 elsewhere.
    fast_dtype = jnp.bfloat16 if _supports_bf16_eup() else jnp.float32
    out_fast = jax.block_until_ready(nn_forward(x, params, compute_dtype=fast_dtype))
    assert out_fast.shape == (N, 2)
    tol = 5e-2 if fast_dtype == jnp.bfloat16 else 2e-5
    assert jnp.allclose(out_fast, ref, atol=tol, rtol=tol), "fast-path Pallas output mismatch"

    print("KERNEL_OK")
</pallas_src>

<mosaic_0001>
module attributes {stable_mosaic.version = 11 : i64} {
  func.func @mlp_kernel(%arg0: i32, %arg1: memref<1x256xf32, #tpu.memory_space<vmem>>, %arg2: memref<128x1xf32, #tpu.memory_space<vmem>>, %arg3: memref<128x1xf32, #tpu.memory_space<vmem>>, %arg4: memref<128x128xf32, #tpu.memory_space<vmem>>, %arg5: memref<128x1xf32, #tpu.memory_space<vmem>>, %arg6: memref<128x128xf32, #tpu.memory_space<vmem>>, %arg7: memref<128x1xf32, #tpu.memory_space<vmem>>, %arg8: memref<128x128xf32, #tpu.memory_space<vmem>>, %arg9: memref<128x1xf32, #tpu.memory_space<vmem>>, %arg10: memref<2x128xf32, #tpu.memory_space<vmem>>, %arg11: memref<2x1xf32, #tpu.memory_space<vmem>>, %arg12: memref<2x256xf32, #tpu.memory_space<vmem>>) attributes {dimension_semantics = [#tpu.dimension_semantics<parallel>], iteration_bounds = array<i64: 4>, scalar_prefetch = 0 : i64, scratch_operands = 0 : i64, tpu.core_type = #tpu.core_type<tc>, window_params = [{transform_indices = @transform_0, window_bounds = array<i64: 1, 256>}, {pipeline_mode = #tpu.pipeline_mode<synchronous>, transform_indices = @transform_1, window_bounds = array<i64: 128, 1>}, {pipeline_mode = #tpu.pipeline_mode<synchronous>, transform_indices = @transform_2, window_bounds = array<i64: 128, 1>}, {pipeline_mode = #tpu.pipeline_mode<synchronous>, transform_indices = @transform_3, window_bounds = array<i64: 128, 128>}, {pipeline_mode = #tpu.pipeline_mode<synchronous>, transform_indices = @transform_4, window_bounds = array<i64: 128, 1>}, {pipeline_mode = #tpu.pipeline_mode<synchronous>, transform_indices = @transform_5, window_bounds = array<i64: 128, 128>}, {pipeline_mode = #tpu.pipeline_mode<synchronous>, transform_indices = @transform_6, window_bounds = array<i64: 128, 1>}, {pipeline_mode = #tpu.pipeline_mode<synchronous>, transform_indices = @transform_7, window_bounds = array<i64: 128, 128>}, {pipeline_mode = #tpu.pipeline_mode<synchronous>, transform_indices = @transform_8, window_bounds = array<i64: 128, 1>}, {pipeline_mode = #tpu.pipeline_mode<synchronous>, transform_indices = @transform_9, window_bounds = array<i64: 2, 128>}, {pipeline_mode = #tpu.pipeline_mode<synchronous>, transform_indices = @transform_10, window_bounds = array<i64: 2, 1>}, {transform_indices = @transform_11, window_bounds = array<i64: 2, 256>}]} {
    %c0 = arith.constant 0 : index
    %c0_0 = arith.constant 0 : index
    %0 = vector.load %arg1[%c0, %c0_0] : memref<1x256xf32, #tpu.memory_space<vmem>>, vector<1x256xf32>
    %c0_1 = arith.constant 0 : index
    %c0_2 = arith.constant 0 : index
    %1 = vector.load %arg2[%c0_1, %c0_2] : memref<128x1xf32, #tpu.memory_space<vmem>>, vector<128x1xf32>
    %2 = vector.broadcast %1 : vector<128x1xf32> to vector<128x256xf32>
    %3 = vector.broadcast %0 : vector<1x256xf32> to vector<128x256xf32>
    %4 = arith.mulf %2, %3 : vector<128x256xf32>
    %c0_3 = arith.constant 0 : index
    %c0_4 = arith.constant 0 : index
    %5 = vector.load %arg3[%c0_3, %c0_4] : memref<128x1xf32, #tpu.memory_space<vmem>>, vector<128x1xf32>
    %6 = vector.broadcast %5 : vector<128x1xf32> to vector<128x256xf32>
    %7 = arith.addf %4, %6 : vector<128x256xf32>
    %8 = math.tanh %7 : vector<128x256xf32>
    %c0_5 = arith.constant 0 : index
    %c0_6 = arith.constant 0 : index
    %9 = vector.load %arg4[%c0_5, %c0_6] : memref<128x128xf32, #tpu.memory_space<vmem>>, vector<128x128xf32>
    %cst = arith.constant dense<0.000000e+00> : vector<128x256xf32>
    %10 = tpu.matmul %9, %8, %cst {dimension_numbers = #tpu.dot_dimension_numbers<[1], [0], [0], [1], [0, 0, 1, 1], [], []>} : vector<128x128xf32>, vector<128x256xf32>, vector<128x256xf32> -> vector<128x256xf32>
    %c0_7 = arith.constant 0 : index
    %c0_8 = arith.constant 0 : index
    %11 = vector.load %arg5[%c0_7, %c0_8] : memref<128x1xf32, #tpu.memory_space<vmem>>, vector<128x1xf32>
    %12 = vector.broadcast %11 : vector<128x1xf32> to vector<128x256xf32>
    %13 = arith.addf %10, %12 : vector<128x256xf32>
    %14 = math.tanh %13 : vector<128x256xf32>
    %c0_9 = arith.constant 0 : index
    %c0_10 = arith.constant 0 : index
    %15 = vector.load %arg6[%c0_9, %c0_10] : memref<128x128xf32, #tpu.memory_space<vmem>>, vector<128x128xf32>
    %cst_11 = arith.constant dense<0.000000e+00> : vector<128x256xf32>
    %16 = tpu.matmul %15, %14, %cst_11 {dimension_numbers = #tpu.dot_dimension_numbers<[1], [0], [0], [1], [0, 0, 1, 1], [], []>} : vector<128x128xf32>, vector<128x256xf32>, vector<128x256xf32> -> vector<128x256xf32>
    %c0_12 = arith.constant 0 : index
    %c0_13 = arith.constant 0 : index
    %17 = vector.load %arg7[%c0_12, %c0_13] : memref<128x1xf32, #tpu.memory_space<vmem>>, vector<128x1xf32>
    %18 = vector.broadcast %17 : vector<128x1xf32> to vector<128x256xf32>
    %19 = arith.addf %16, %18 : vector<128x256xf32>
    %20 = math.tanh %19 : vector<128x256xf32>
    %c0_14 = arith.constant 0 : index
    %c0_15 = arith.constant 0 : index
    %21 = vector.load %arg8[%c0_14, %c0_15] : memref<128x128xf32, #tpu.memory_space<vmem>>, vector<128x128xf32>
    %cst_16 = arith.constant dense<0.000000e+00> : vector<128x256xf32>
    %22 = tpu.matmul %21, %20, %cst_16 {dimension_numbers = #tpu.dot_dimension_numbers<[1], [0], [0], [1], [0, 0, 1, 1], [], []>} : vector<128x128xf32>, vector<128x256xf32>, vector<128x256xf32> -> vector<128x256xf32>
    %c0_17 = arith.constant 0 : index
    %c0_18 = arith.constant 0 : index
    %23 = vector.load %arg9[%c0_17, %c0_18] : memref<128x1xf32, #tpu.memory_space<vmem>>, vector<128x1xf32>
    %24 = vector.broadcast %23 : vector<128x1xf32> to vector<128x256xf32>
    %25 = arith.addf %22, %24 : vector<128x256xf32>
    %26 = math.tanh %25 : vector<128x256xf32>
    %c0_19 = arith.constant 0 : index
    %c0_20 = arith.constant 0 : index
    %27 = vector.load %arg10[%c0_19, %c0_20] : memref<2x128xf32, #tpu.memory_space<vmem>>, vector<2x128xf32>
    %cst_21 = arith.constant dense<0.000000e+00> : vector<2x256xf32>
    %28 = tpu.matmul %27, %26, %cst_21 {dimension_numbers = #tpu.dot_dimension_numbers<[1], [0], [0], [1], [0, 0, 1, 1], [], []>} : vector<2x128xf32>, vector<128x256xf32>, vector<2x256xf32> -> vector<2x256xf32>
    %c0_22 = arith.constant 0 : index
    %c0_23 = arith.constant 0 : index
    %29 = vector.load %arg11[%c0_22, %c0_23] : memref<2x1xf32, #tpu.memory_space<vmem>>, vector<2x1xf32>
    %30 = vector.broadcast %29 : vector<2x1xf32> to vector<2x256xf32>
    %31 = arith.addf %28, %30 : vector<2x256xf32>
    %cst_24 = arith.constant 2.000000e+01 : f32
    %32 = vector.broadcast %cst_24 : f32 to vector<2x256xf32>
    %33 = arith.cmpf ogt, %31, %32 : vector<2x256xf32>
    %cst_25 = arith.constant 2.000000e+01 : f32
    %34 = vector.broadcast %cst_25 : f32 to vector<2x256xf32>
    %35 = arith.minimumf %31, %34 : vector<2x256xf32>
    %36 = math.exp %35 : vector<2x256xf32>
    %37 = math.log1p %36 : vector<2x256xf32>
    %38 = arith.select %33, %31, %37 : vector<2x256xi1>, vector<2x256xf32>
    %c0_26 = arith.constant 0 : index
    %c0_27 = arith.constant 0 : index
    %39 = vector.load %arg12[%c0_26, %c0_27] : memref<2x256xf32, #tpu.memory_space<vmem>>, vector<2x256xf32>
    tpu.vector_store %arg12[%c0_26, %c0_27], %38 {strides = array<i32>} : memref<2x256xf32, #tpu.memory_space<vmem>>, vector<2x256xf32>,
    return
  }
  func.func @transform_0(%arg0: i32) -> (i32, i32) {
    %c0_i32 = arith.constant 0 : i32
    %c0_i32_0 = arith.constant 0 : i32
    return %c0_i32, %arg0 : i32, i32
  }
  func.func @transform_1(%arg0: i32) -> (i32, i32) {
    %c0_i32 = arith.constant 0 : i32
    %c0_i32_0 = arith.constant 0 : i32
    %c0_i32_1 = arith.constant 0 : i32
    return %c0_i32, %c0_i32_0 : i32, i32
  }
  func.func @transform_2(%arg0: i32) -> (i32, i32) {
    %c0_i32 = arith.constant 0 : i32
    %c0_i32_0 = arith.constant 0 : i32
    %c0_i32_1 = arith.constant 0 : i32
    return %c0_i32, %c0_i32_0 : i32, i32
  }
  func.func @transform_3(%arg0: i32) -> (i32, i32) {
    %c0_i32 = arith.constant 0 : i32
    %c0_i32_0 = arith.constant 0 : i32
    %c0_i32_1 = arith.constant 0 : i32
    return %c0_i32, %c0_i32_0 : i32, i32
  }
  func.func @transform_4(%arg0: i32) -> (i32, i32) {
    %c0_i32 = arith.constant 0 : i32
    %c0_i32_0 = arith.constant 0 : i32
    %c0_i32_1 = arith.constant 0 : i32
    return %c0_i32, %c0_i32_0 : i32, i32
  }
  func.func @transform_5(%arg0: i32) -> (i32, i32) {
    %c0_i32 = arith.constant 0 : i32
    %c0_i32_0 = arith.constant 0 : i32
    %c0_i32_1 = arith.constant 0 : i32
    return %c0_i32, %c0_i32_0 : i32, i32
  }
  func.func @transform_6(%arg0: i32) -> (i32, i32) {
    %c0_i32 = arith.constant 0 : i32
    %c0_i32_0 = arith.constant 0 : i32
    %c0_i32_1 = arith.constant 0 : i32
    return %c0_i32, %c0_i32_0 : i32, i32
  }
  func.func @transform_7(%arg0: i32) -> (i32, i32) {
    %c0_i32 = arith.constant 0 : i32
    %c0_i32_0 = arith.constant 0 : i32
    %c0_i32_1 = arith.constant 0 : i32
    return %c0_i32, %c0_i32_0 : i32, i32
  }
  func.func @transform_8(%arg0: i32) -> (i32, i32) {
    %c0_i32 = arith.constant 0 : i32
    %c0_i32_0 = arith.constant 0 : i32
    %c0_i32_1 = arith.constant 0 : i32
    return %c0_i32, %c0_i32_0 : i32, i32
  }
  func.func @transform_9(%arg0: i32) -> (i32, i32) {
    %c0_i32 = arith.constant 0 : i32
    %c0_i32_0 = arith.constant 0 : i32
    %c0_i32_1 = arith.constant 0 : i32
    return %c0_i32, %c0_i32_0 : i32, i32
  }
  func.func @transform_10(%arg0: i32) -> (i32, i32) {
    %c0_i32 = arith.constant 0 : i32
    %c0_i32_0 = arith.constant 0 : i32
    %c0_i32_1 = arith.constant 0 : i32
    return %c0_i32, %c0_i32_0 : i32, i32
  }
  func.func @transform_11(%arg0: i32) -> (i32, i32) {
    %c0_i32 = arith.constant 0 : i32
    %c0_i32_0 = arith.constant 0 : i32
    return %c0_i32, %arg0 : i32, i32
  }
}

</mosaic_0001>

<bundles_post_ra>
// kernel: nn_forward.1
= control target key start
LH: loop header
LB: loop body
LE: loop exit
PB: predicated region body
PF: predicated region fallthrough
CT: control target
= control target key end

     0   :  { %s2162_s17 = smov 0   ;;  %s2783_s0 = inlined_call_operand.vmem [shape: f32[1,1024], index: 0, kind: input, shape index: {}]   ;;  %s2784_s1 = inlined_call_operand.vmem [shape: f32[128,1], index: 1, kind: input, shape index: {}]   ;;  %s2785_s2 = inlined_call_operand.vmem [shape: f32[128,1], index: 2, kind: input, shape index: {}]   ;;  %s2786_s3 = inlined_call_operand.vmem [shape: f32[128,128], index: 3, kind: input, shape index: {}]   ;;  %s2787_s4 = inlined_call_operand.vmem [shape: f32[128,1], index: 4, kind: input, shape index: {}]   ;;  %s2788_s5 = inlined_call_operand.vmem [shape: f32[128,128], index: 5, kind: input, shape index: {}]   ;;  %s2789_s6 = inlined_call_operand.vmem [shape: f32[128,1], index: 6, kind: input, shape index: {}]   ;;  %s2790_s7 = inlined_call_operand.vmem [shape: f32[128,128], index: 7, kind: input, shape index: {}]   ;;  %s2791_s8 = inlined_call_operand.vmem [shape: f32[128,1], index: 8, kind: input, shape index: {}]   ;;  %s2792_s9 = inlined_call_operand.vmem [shape: f32[2,128], index: 9, kind: input, shape index: {}]   ;;  %s2793_s10 = inlined_call_operand.vmem [shape: f32[2,1], index: 10, kind: input, shape index: {}]   ;;  %s2794_s11 = inlined_call_operand.vmem [shape: f32[2,1024], index: 11, kind: output, shape index: {}]  }
   0x1 LB: > { %s1773_s18 = sadd.s32 4294967295, %s2098_s17   ;;  %p1777_p0 = scmp.ge.s32.totalorder %s2098_s17, 1  ;;  %s2098_s17 = sphi %s2162_s17, %s21_s17  }
   0x2   : > { %p337_p1 = scmp.lt.s32.totalorder %s2098_s17, 5 }
   0x4   : > { %p338_p2 = pnand %p1777_p0, %p337_p1 }
   0x5   : > { %s1778_s25 = sshll.u32 (!%p338_p2), %s1773_s18, 1 }
   0x6   : > { %341 = sbr.rel (%p338_p2) target bundleno = 1333 (0x535), region = 64  ;;  %p377_p3 = scmp.lt.s32.totalorder (!%p338_p2), %s1778_s25, 7 }
   0xb   : > { %v542_v0 = vld [vmem:[%s2785_s2 + $0x78] sm:$0xff]  ;;  %v2100_v2 = vmov 0   ;;  %v402_v3 = vld [vmem:[%s2784_s1 + $0x70] sm:$0xff]  ;;  %v401_v4 = vld [vmem:[%s2784_s1 + $0x68] sm:$0xff]  ;;  %v2101_v43 = vmov 0.0   ;;  %v485_v58 = vlaneseq  ;;  %s2796_s25 = smov (!%p377_p3, %s1778_s25), 7 }
   0xc   : > { %v403_v1 = vld [vmem:[%s2784_s1 + $0x78] sm:$0xff]  ;;  %1827 = vset.pattern.permute.xlu1 %v2100_v2  ;;  %1826 = vset.pattern.permute.xlu0 %v2100_v2  ;;  %v541_v5 = vld [vmem:[%s2785_s2 + $0x70] sm:$0xff]  ;;  %v400_v6 = vld [vmem:[%s2784_s1 + $0x60] sm:$0xff]  ;;  %s379_s22 = scalar_lea.vmem %s2783_s0, %s2796_s25  ;;  %s1780_s28 = sshll.u32 %s2796_s25, 1 }
   0xd   : > { %620 = vperm.xlu1 %1827, %v542_v0   ;;  %481 = vperm.xlu0 %1826, %v403_v1   ;;  %v540_v7 = vld [vmem:[%s2785_s2 + $0x68] sm:$0xff]  ;;  %v399_v8 = vld [vmem:[%s2784_s1 + $0x58] sm:$0xff]  ;;  %v539_v9 = vld [vmem:[%s2785_s2 + $0x60] sm:$0xff]  ;;  %v486_v61 = vshrl.u32 %v485_v58, 7  ;;  %s385_s12 = scalar_lea.vmem %s2794_s11, %s1780_s28 }
   0xe   : > { %v398_v10 = vld [vmem:[%s2784_s1 + $0x50] sm:$0xff]  ;;  %v538_v11 = vld [vmem:[%s2785_s2 + $0x58] sm:$0xff]  ;;  %v397_v12 = vld [vmem:[%s2784_s1 + $0x48] sm:$0xff]  ;;  %863 = vmatprep.mubr.f32.mxu0 %v2101_v43  ;;  %911 = vmatprep.mubr.f32.mxu1 %v2101_v43 }
   0xf   : > { %v537_v13 = vld [vmem:[%s2785_s2 + $0x50] sm:$0xff]  ;;  %v396_v14 = vld [vmem:[%s2784_s1 + $0x40] sm:$0xff]  ;;  %v536_v15 = vld [vmem:[%s2785_s2 + $0x48] sm:$0xff]  ;;  %v487_v0 = vsub.s32 0, %v486_v61  ;;  %v491_v1 = vsub.s32 1, %v486_v61 }
  0x10   : > { %v395_v16 = vld [vmem:[%s2784_s1 + $0x38] sm:$0xff]  ;;  %v535_v17 = vld [vmem:[%s2785_s2 + $0x40] sm:$0xff]  ;;  %v394_v18 = vld [vmem:[%s2784_s1 + $0x30] sm:$0xff] }
  0x11   : > { %476 = vperm.xlu0 %1826, %v402_v3   ;;  %471 = vperm.xlu1 %1827, %v401_v4   ;;  %v534_v19 = vld [vmem:[%s2785_s2 + $0x38] sm:$0xff]  ;;  %v393_v20 = vld [vmem:[%s2784_s1 + $0x28] sm:$0xff]  ;;  %v533_v21 = vld [vmem:[%s2785_s2 + $0x30] sm:$0xff] }
  0x12   : > { %v392_v22 = vld [vmem:[%s2784_s1 + $0x20] sm:$0xff]  ;;  %v532_v23 = vld [vmem:[%s2785_s2 + $0x28] sm:$0xff]  ;;  %v391_v24 = vld [vmem:[%s2784_s1 + $0x18] sm:$0xff] }
  0x13   : > { %v531_v25 = vld [vmem:[%s2785_s2 + $0x20] sm:$0xff]  ;;  %v390_v26 = vld [vmem:[%s2784_s1 + $0x10] sm:$0xff]  ;;  %v530_v27 = vld [vmem:[%s2785_s2 + $0x18] sm:$0xff] }
  0x14   : > { %v389_v28 = vld [vmem:[%s2784_s1 + $0x8] sm:$0xff]  ;;  %v529_v29 = vld [vmem:[%s2785_s2 + $0x10] sm:$0xff]  ;;  %v388_v30 = vld [vmem:[%s2784_s1] sm:$0xff] }
  0x15   : > { %615 = vperm.xlu0 %1826, %v541_v5   ;;  %466 = vperm.xlu1 %1827, %v400_v6   ;;  %v528_v31 = vld [vmem:[%s2785_s2 + $0x8] sm:$0xff]  ;;  %v527_v32 = vld [vmem:[%s2785_s2] sm:$0xff]  ;;  %v718_v33 = vld [vmem:[%s2787_s4 + $0x78] sm:$0xff] }
  0x16   : > { %v717_v34 = vld [vmem:[%s2787_s4 + $0x70] sm:$0xff]  ;;  %v716_v35 = vld [vmem:[%s2787_s4 + $0x68] sm:$0xff]  ;;  %v715_v36 = vld [vmem:[%s2787_s4 + $0x60] sm:$0xff] }
  0x17   : > { %v714_v37 = vld [vmem:[%s2787_s4 + $0x58] sm:$0xff]  ;;  %v713_v38 = vld [vmem:[%s2787_s4 + $0x50] sm:$0xff]  ;;  %v712_v39 = vld [vmem:[%s2787_s4 + $0x48] sm:$0xff] }
  0x18   : > { %v711_v40 = vld [vmem:[%s2787_s4 + $0x40] sm:$0xff]  ;;  %v710_v41 = vld [vmem:[%s2787_s4 + $0x38] sm:$0xff]  ;;  %v709_v42 = vld [vmem:[%s2787_s4 + $0x30] sm:$0xff] }
  0x19   : > { %610 = vperm.xlu0 %1826, %v540_v7   ;;  %461 = vperm.xlu1 %1827, %v399_v8   ;;  %v708_v44 = vld [vmem:[%s2787_s4 + $0x28] sm:$0xff]  ;;  %v707_v45 = vld [vmem:[%s2787_s4 + $0x20] sm:$0xff]  ;;  %v706_v46 = vld [vmem:[%s2787_s4 + $0x18] sm:$0xff] }
  0x1a   : > { %v705_v47 = vld [vmem:[%s2787_s4 + $0x10] sm:$0xff]  ;;  %v704_v48 = vld [vmem:[%s2787_s4 + $0x8] sm:$0xff]  ;;  %v703_v49 = vld [vmem:[%s2787_s4] sm:$0xff] }
  0x1b   : > { %v1023_v50 = vld [vmem:[%s2789_s6 + $0x78] sm:$0xff]  ;;  %v1022_v51 = vld [vmem:[%s2789_s6 + $0x70] sm:$0xff]  ;;  %v1021_v52 = vld [vmem:[%s2789_s6 + $0x68] sm:$0xff] }
  0x1c   : > { %v1020_v53 = vld [vmem:[%s2789_s6 + $0x60] sm:$0xff]  ;;  %v1019_v54 = vld [vmem:[%s2789_s6 + $0x58] sm:$0xff]  ;;  %v1018_v55 = vld [vmem:[%s2789_s6 + $0x50] sm:$0xff] }
  0x1d   : > { %605 = vperm.xlu0 %1826, %v539_v9   ;;  %456 = vperm.xlu1 %1827, %v398_v10   ;;  %v1017_v56 = vld [vmem:[%s2789_s6 + $0x48] sm:$0xff]  ;;  %v1016_v57 = vld [vmem:[%s2789_s6 + $0x40] sm:$0xff]  ;;  %v1015_v59 = vld [vmem:[%s2789_s6 + $0x38] sm:$0xff] }
  0x1e   : > { %v1014_v60 = vld [vmem:[%s2789_s6 + $0x30] sm:$0xff]  ;;  %v1013_v62 = vld [vmem:[%s2789_s6 + $0x28] sm:$0xff]  ;;  %v1012_v63 = vld [vmem:[%s2789_s6 + $0x20] sm:$0xff] }
  0x1f   : > { %v1011_v2 = vld [vmem:[%s2789_s6 + $0x18] sm:$0xff]  ;;  %v1010_v3 = vld [vmem:[%s2789_s6 + $0x10] sm:$0xff]  ;;  %v387_v4 = vld [vmem:[%s379_s22] sm:$0x3] }
  0x20   : > { %v2366_v5 = vrot.slane %v387_v4, %v487_v0  ;;  %v2368_v6 = vrot.slane %v387_v4, %v491_v1  ;;  %v1009_v7 = vld [vmem:[%s2789_s6 + $0x8] sm:$0xff]  ;;  %v1008_v8 = vld [vmem:[%s2789_s6] sm:$0xff] }
  0x21   : > { %600 = vperm.xlu0 %1826, %v538_v11   ;;  %451 = vperm.xlu1 %1827, %v397_v12  }
  0x25   : > { %595 = vperm.xlu0 %1826, %v537_v13   ;;  %446 = vperm.xlu1 %1827, %v396_v14   ;;  %v1328_v13 = vld [vmem:[%s2791_s8 + $0x78] sm:$0xff]  ;;  %v1327_v14 = vld [vmem:[%s2791_s8 + $0x70] sm:$0xff] }
  0x29   : > { %590 = vperm.xlu0 %1826, %v536_v15   ;;  %441 = vperm.xlu1 %1827, %v395_v16  }
  0x2d   : > { %585 = vperm.xlu0 %1826, %v535_v17   ;;  %436 = vperm.xlu1 %1827, %v394_v18  }
  0x31   : > { %580 = vperm.xlu0 %1826, %v534_v19   ;;  %431 = vperm.xlu1 %1827, %v393_v20   ;;  %v1326_v19 = vld [vmem:[%s2791_s8 + $0x68] sm:$0xff] }
  0x35   : > { %575 = vperm.xlu0 %1826, %v533_v21   ;;  %426 = vperm.xlu1 %1827, %v392_v22   ;;  %v1325_v22 = vld [vmem:[%s2791_s8 + $0x60] sm:$0xff] }
  0x39   : > { %570 = vperm.xlu0 %1826, %v532_v23   ;;  %421 = vperm.xlu1 %1827, %v391_v24  }
  0x3d   : > { %565 = vperm.xlu0 %1826, %v531_v25   ;;  %416 = vperm.xlu1 %1827, %v390_v26  }
  0x41   : > { %560 = vperm.xlu0 %1826, %v530_v27   ;;  %411 = vperm.xlu1 %1827, %v389_v28   ;;  %v1324_v27 = vld [vmem:[%s2791_s8 + $0x58] sm:$0xff] }
  0x45   : > { %555 = vperm.xlu0 %1826, %v529_v29   ;;  %406 = vperm.xlu1 %1827, %v388_v30   ;;  %v1323_v30 = vld [vmem:[%s2791_s8 + $0x50] sm:$0xff] }
  0x49   : > { %550 = vperm.xlu0 %1826, %v528_v31   ;;  %545 = vperm.xlu1 %1827, %v527_v32  }
  0x4d   : > { %796 = vperm.xlu0 %1826, %v718_v33   ;;  %791 = vperm.xlu1 %1827, %v717_v34  }
  0x51   : > { %786 = vperm.xlu0 %1826, %v716_v35   ;;  %781 = vperm.xlu1 %1827, %v715_v36   ;;  %v1322_v35 = vld [vmem:[%s2791_s8 + $0x48] sm:$0xff] }
  0x55   : > { %776 = vperm.xlu0 %1826, %v714_v37   ;;  %771 = vperm.xlu1 %1827, %v713_v38   ;;  %v1321_v38 = vld [vmem:[%s2791_s8 + $0x40] sm:$0xff] }
  0x59   : > { %766 = vperm.xlu0 %1826, %v712_v39   ;;  %761 = vperm.xlu1 %1827, %v711_v40  }
  0x5d   : > { %756 = vperm.xlu0 %1826, %v710_v41   ;;  %751 = vperm.xlu1 %1827, %v709_v42  }
  0x61   : > { %746 = vperm.xlu0 %1826, %v708_v44   ;;  %741 = vperm.xlu1 %1827, %v707_v45  }
  0x65   : > { %736 = vperm.xlu0 %1826, %v706_v46   ;;  %731 = vperm.xlu1 %1827, %v705_v47  }
  0x69   : > { %726 = vperm.xlu0 %1826, %v704_v48   ;;  %721 = vperm.xlu1 %1827, %v703_v49   ;;  %v1320_v48 = vld [vmem:[%s2791_s8 + $0x38] sm:$0xff] }
  0x6d   : > { %1101 = vperm.xlu0 %1826, %v1023_v50   ;;  %1096 = vperm.xlu1 %1827, %v1022_v51   ;;  %v1319_v51 = vld [vmem:[%s2791_s8 + $0x30] sm:$0xff] }
  0x71   : > { %1091 = vperm.xlu0 %1826, %v1021_v52   ;;  %1086 = vperm.xlu1 %1827, %v1020_v53  }
  0x75   : > { %1081 = vperm.xlu0 %1826, %v1019_v54   ;;  %1076 = vperm.xlu1 %1827, %v1018_v55  }
  0x79   : > { %1071 = vperm.xlu0 %1826, %v1017_v56   ;;  %1066 = vperm.xlu1 %1827, %v1016_v57   ;;  %v1318_v56 = vld [vmem:[%s2791_s8 + $0x28] sm:$0xff] }
  0x7d   : > { %1061 = vperm.xlu0 %1826, %v1015_v59   ;;  %1056 = vperm.xlu1 %1827, %v1014_v60   ;;  %v1317_v60 = vld [vmem:[%s2791_s8 + $0x20] sm:$0xff] }
  0x81   : > { %1051 = vperm.xlu0 %1826, %v1013_v62   ;;  %1046 = vperm.xlu1 %1827, %v1012_v63  }
  0x85   : > { %1041 = vperm.xlu0 %1826, %v1011_v2   ;;  %1036 = vperm.xlu1 %1827, %v1010_v3   ;;  %v1316_v2 = vld [vmem:[%s2791_s8 + $0x18] sm:$0xff] }
  0x88   : > { %v621_v9 = vpop.permute.xlu1 %620  ;;  %v482_v10 = vpop.permute.xlu0 %481 }
  0x89   : > { %v525_v11 = vmul.f32 %v2366_v5, %v482_v10  ;;  %v526_v12 = vmul.f32 %v2368_v6, %v482_v10  ;;  %1031 = vperm.xlu0 %1826, %v1009_v7   ;;  %1026 = vperm.xlu1 %1827, %v1008_v8   ;;  %v1315_v8 = vld [vmem:[%s2791_s8 + $0x10] sm:$0xff] }
  0x8b   : > { %v653_v15 = vadd.f32 %v621_v9, %v525_v11  ;;  %v654_v16 = vadd.f32 %v621_v9, %v526_v12 }
  0x8c   : > { %v477_v17 = vpop.permute.xlu0 %476  ;;  %v472_v18 = vpop.permute.xlu1 %471 }
  0x8d   : > { %1828 = vtanh.f32 %v653_v15  ;;  %1406 = vperm.xlu0 %1826, %v1328_v13   ;;  %1401 = vperm.xlu1 %1827, %v1327_v14   ;;  %v523_v20 = vmul.f32 %v2366_v5, %v477_v17  ;;  %v524_v21 = vmul.f32 %v2368_v6, %v477_v17  ;;  %v521_v28 = vmul.f32 %v2366_v5, %v472_v18  ;;  %v1314_v14 = vld [vmem:[%s2791_s8 + $0x8] sm:$0xff] }
  0x8e   : > { %1830 = vtanh.f32 %v654_v16  ;;  %v522_v29 = vmul.f32 %v2368_v6, %v472_v18  ;;  %v1313_v18 = vld [vmem:[%s2791_s8] sm:$0xff] }
  0x90   : > { %v616_v23 = vpop.permute.xlu0 %615  ;;  %v467_v24 = vpop.permute.xlu1 %466 }
  0x91   : > { %v651_v25 = vadd.f32 %v616_v23, %v523_v20  ;;  %v652_v26 = vadd.f32 %v616_v23, %v524_v21  ;;  %1396 = vperm.xlu0 %1826, %v1326_v19   ;;  %1391 = vperm.xlu1 %1827, %v1325_v22   ;;  %v519_v36 = vmul.f32 %v2366_v5, %v467_v24 }
  0x92   : > { %v520_v37 = vmul.f32 %v2368_v6, %v467_v24  ;;  %v1603_v24 = vld [vmem:[%s2793_s10] sm:$0x3] }
  0x93   : > { %1832 = vtanh.f32 %v651_v25 }
  0x94   : > { %1834 = vtanh.f32 %v652_v26  ;;  %v611_v31 = vpop.permute.xlu0 %610  ;;  %v462_v32 = vpop.permute.xlu1 %461 }
  0x95   : > { %v649_v33 = vadd.f32 %v611_v31, %v521_v28  ;;  %v650_v34 = vadd.f32 %v611_v31, %v522_v29  ;;  %1386 = vperm.xlu0 %1826, %v1324_v27   ;;  %1381 = vperm.xlu1 %1827, %v1323_v30   ;;  %v517_v46 = vmul.f32 %v2366_v5, %v462_v32 }
  0x96   : > { %v518_v47 = vmul.f32 %v2368_v6, %v462_v32 }
  0x97   : > { %1836 = vtanh.f32 %v649_v33 }
  0x98   : > { %1838 = vtanh.f32 %v650_v34  ;;  %v606_v39 = vpop.permute.xlu0 %605  ;;  %v457_v40 = vpop.permute.xlu1 %456 }
  0x99   : > { %v647_v41 = vadd.f32 %v606_v39, %v519_v36  ;;  %v648_v42 = vadd.f32 %v606_v39, %v520_v37  ;;  %1376 = vperm.xlu0 %1826, %v1322_v35   ;;  %1371 = vperm.xlu1 %1827, %v1321_v38   ;;  %v515_v54 = vmul.f32 %v2366_v5, %v457_v40 }
  0x9a   : > { %v1829_v44 = vpop.eup %1828  ;;  %v516_v55 = vmul.f32 %v2368_v6, %v457_v40 }
  0x9b   : > { %v1831_v45 = vpop.eup %1830  ;;  %1840 = vtanh.f32 %v647_v41 }
  0x9c   : > { %1842 = vtanh.f32 %v648_v42  ;;  %799 = vmatprep.subr.mxu0 %v1831_v45  ;;  %1784 = vmatprep.subr.mxu1 %v1831_v45  ;;  %v601_v49 = vpop.permute.xlu0 %600  ;;  %v452_v50 = vpop.permute.xlu1 %451 }
  0x9d   : > { %v645_v52 = vadd.f32 %v601_v49, %v517_v46  ;;  %v646_v53 = vadd.f32 %v601_v49, %v518_v47  ;;  %800 = vmatpush1.msra.mxu0 %v1829_v44  ;;  %1800 = vmatpush1.msra.mxu1 %v1829_v44  ;;  %v513_v0 = vmul.f32 %v2366_v5, %v452_v50 }
  0x9e   : > { %1366 = vperm.xlu0 %1826, %v1320_v48   ;;  %1361 = vperm.xlu1 %1827, %v1319_v51   ;;  %v514_v1 = vmul.f32 %v2368_v6, %v452_v50 }
  0x9f   : > { %1844 = vtanh.f32 %v645_v52 }
  0xa0   : > { %v1833_v57 = vpop.eup %1832  ;;  %1846 = vtanh.f32 %v646_v53  ;;  %v596_v58 = vpop.permute.xlu0 %595 }
  0xa1   : > { %v447_v59 = vpop.permute.xlu1 %446  ;;  %v1835_v61 = vpop.eup %1834  ;;  %v643_v62 = vadd.f32 %v596_v58, %v515_v54  ;;  %v644_v63 = vadd.f32 %v596_v58, %v516_v55 }
  0xa2   : > { %1356 = vperm.xlu0 %1826, %v1318_v56   ;;  %801 = vmatprep.subr.mxu0 %v1835_v61  ;;  %v511_v12 = vmul.f32 %v2366_v5, %v447_v59  ;;  %v512_v13 = vmul.f32 %v2368_v6, %v447_v59 }
  0xa3   : > { %1848 = vtanh.f32 %v643_v62  ;;  %1351 = vperm.xlu1 %1827, %v1317_v60   ;;  %1785 = vmatprep.subr.mxu1 %v1835_v61 }
  0xa4   : > { %v1837_v3 = vpop.eup %1836  ;;  %1850 = vtanh.f32 %v644_v63  ;;  %802 = vmatpush1.msra.mxu0 %v1833_v57  ;;  %1801 = vmatpush1.msra.mxu1 %v1833_v57  ;;  %v591_v4 = vpop.permute.xlu0 %590 }
  0xa5   : > { %v442_v7 = vpop.permute.xlu1 %441  ;;  %v1839_v9 = vpop.eup %1838  ;;  %v641_v10 = vadd.f32 %v591_v4, %v513_v0  ;;  %v642_v11 = vadd.f32 %v591_v4, %v514_v1 }
  0xa6   : > { %1346 = vperm.xlu0 %1826, %v1316_v2   ;;  %803 = vmatprep.subr.mxu0 %v1839_v9  ;;  %v509_v22 = vmul.f32 %v2366_v5, %v442_v7  ;;  %v510_v23 = vmul.f32 %v2368_v6, %v442_v7 }
  0xa7   : > { %1852 = vtanh.f32 %v641_v10  ;;  %1341 = vperm.xlu1 %1827, %v1315_v8   ;;  %1786 = vmatprep.subr.mxu1 %v1839_v9 }
  0xa8   : > { %v1841_v15 = vpop.eup %1840  ;;  %1854 = vtanh.f32 %v642_v11  ;;  %804 = vmatpush1.msra.mxu0 %v1837_v3  ;;  %1802 = vmatpush1.msra.mxu1 %v1837_v3  ;;  %v586_v16 = vpop.permute.xlu0 %585 }
  0xa9   : > { %v437_v17 = vpop.permute.xlu1 %436  ;;  %v1843_v19 = vpop.eup %1842  ;;  %v639_v20 = vadd.f32 %v586_v16, %v511_v12  ;;  %v640_v21 = vadd.f32 %v586_v16, %v512_v13 }
  0xaa   : > { %1336 = vperm.xlu0 %1826, %v1314_v14   ;;  %805 = vmatprep.subr.mxu0 %v1843_v19  ;;  %v507_v31 = vmul.f32 %v2366_v5, %v437_v17  ;;  %v508_v32 = vmul.f32 %v2368_v6, %v437_v17 }
  0xab   : > { %1856 = vtanh.f32 %v639_v20  ;;  %1331 = vperm.xlu1 %1827, %v1313_v18   ;;  %1787 = vmatprep.subr.mxu1 %v1843_v19 }
  0xac   : > { %v1845_v25 = vpop.eup %1844  ;;  %1858 = vtanh.f32 %v640_v21  ;;  %806 = vmatpush1.msra.mxu0 %v1841_v15  ;;  %1803 = vmatpush1.msra.mxu1 %v1841_v15  ;;  %v581_v26 = vpop.permute.xlu0 %580 }
  0xad   : > { %v432_v27 = vpop.permute.xlu1 %431  ;;  %v1847_v28 = vpop.eup %1846  ;;  %v637_v29 = vadd.f32 %v581_v26, %v509_v22  ;;  %v638_v30 = vadd.f32 %v581_v26, %v510_v23 }
  0xae   : > { %1606 = vperm.xlu0 %1826, %v1603_v24   ;;  %807 = vmatprep.subr.mxu0 %v1847_v28  ;;  %v505_v39 = vmul.f32 %v2366_v5, %v432_v27  ;;  %v506_v40 = vmul.f32 %v2368_v6, %v432_v27 }
  0xaf   : > { %1860 = vtanh.f32 %v637_v29  ;;  %1788 = vmatprep.subr.mxu1 %v1847_v28  ;;  %808 = vmatpush1.msra.mxu0 %v1845_v25  ;;  %v687_v29 = vld [vmem:[%s2786_s3] sm:$0xff] }
  0xb0   : > { %v1849_v33 = vpop.eup %1848  ;;  %1862 = vtanh.f32 %v638_v30  ;;  %1804 = vmatpush1.msra.mxu1 %v1845_v25  ;;  %v576_v34 = vpop.permute.xlu0 %575  ;;  %v695_v30 = vld [vmem:[%s2786_s3 + $0x40] sm:$0xff] }
  0xb1   : > { %v427_v35 = vpop.permute.xlu1 %426  ;;  %v1851_v36 = vpop.eup %1850  ;;  %v635_v37 = vadd.f32 %v576_v34, %v507_v31  ;;  %v636_v38 = vadd.f32 %v576_v34, %v508_v32  ;;  %v688_v32 = vld [vmem:[%s2786_s3 + $0x8] sm:$0xff]  ;;  %v689_v34 = vld [vmem:[%s2786_s3 + $0x10] sm:$0xff] }
  0xb2   : > { %809 = vmatprep.subr.mxu0 %v1851_v36  ;;  %1789 = vmatprep.subr.mxu1 %v1851_v36  ;;  %v503_v48 = vmul.f32 %v2366_v5, %v427_v35  ;;  %v504_v49 = vmul.f32 %v2368_v6, %v427_v35  ;;  %v697_v35 = vld [vmem:[%s2786_s3 + $0x50] sm:$0xff]  ;;  %v690_v36 = vld [vmem:[%s2786_s3 + $0x18] sm:$0xff] }
  0xb3   : > { %1864 = vtanh.f32 %v635_v37  ;;  %810 = vmatpush1.msra.mxu0 %v1849_v33  ;;  %1805 = vmatpush1.msra.mxu1 %v1849_v33  ;;  %v696_v33 = vld [vmem:[%s2786_s3 + $0x48] sm:$0xff]  ;;  %v698_v37 = vld [vmem:[%s2786_s3 + $0x58] sm:$0xff] }
  0xb4   : > { %v1853_v41 = vpop.eup %1852  ;;  %1866 = vtanh.f32 %v636_v38  ;;  %v571_v42 = vpop.permute.xlu0 %570  ;;  %v691_v38 = vld [vmem:[%s2786_s3 + $0x20] sm:$0xff] }
  0xb5   : > { %v422_v44 = vpop.permute.xlu1 %421  ;;  %v1855_v45 = vpop.eup %1854  ;;  %v633_v46 = vadd.f32 %v571_v42, %v505_v39  ;;  %v634_v47 = vadd.f32 %v571_v42, %v506_v40  ;;  %v699_v39 = vld [vmem:[%s2786_s3 + $0x60] sm:$0xff]  ;;  %v692_v40 = vld [vmem:[%s2786_s3 + $0x28] sm:$0xff]  ;;  %v693_v42 = vld [vmem:[%s2786_s3 + $0x30] sm:$0xff] }
  0xb6   : > { %811 = vmatprep.subr.mxu0 %v1855_v45  ;;  %1790 = vmatprep.subr.mxu1 %v1855_v45  ;;  %v501_v56 = vmul.f32 %v2366_v5, %v422_v44  ;;  %v502_v57 = vmul.f32 %v2368_v6, %v422_v44  ;;  %v701_v44 = vld [vmem:[%s2786_s3 + $0x70] sm:$0xff]  ;;  %v694_v45 = vld [vmem:[%s2786_s3 + $0x38] sm:$0xff] }
  0xb7   : > { %1868 = vtanh.f32 %v633_v46  ;;  %812 = vmatpush1.msra.mxu0 %v1853_v41  ;;  %1806 = vmatpush1.msra.mxu1 %v1853_v41  ;;  %v700_v41 = vld [vmem:[%s2786_s3 + $0x68] sm:$0xff]  ;;  %v702_v46 = vld [vmem:[%s2786_s3 + $0x78] sm:$0xff] }
  0xb8   : > { %v1857_v50 = vpop.eup %1856  ;;  %1870 = vtanh.f32 %v634_v47  ;;  %v566_v51 = vpop.permute.xlu0 %565 }
  0xb9   : > { %v417_v52 = vpop.permute.xlu1 %416  ;;  %v1859_v53 = vpop.eup %1858  ;;  %v631_v54 = vadd.f32 %v566_v51, %v503_v48  ;;  %v632_v55 = vadd.f32 %v566_v51, %v504_v49 }
  0xba   : > { %813 = vmatprep.subr.mxu0 %v1859_v53  ;;  %1791 = vmatprep.subr.mxu1 %v1859_v53  ;;  %v499_v0 = vmul.f32 %v2366_v5, %v417_v52  ;;  %v500_v1 = vmul.f32 %v2368_v6, %v417_v52 }
  0xbb   : > { %1872 = vtanh.f32 %v631_v54  ;;  %814 = vmatpush1.msra.mxu0 %v1857_v50  ;;  %1807 = vmatpush1.msra.mxu1 %v1857_v50 }
  0xbc   : > { %v1861_v58 = vpop.eup %1860  ;;  %1874 = vtanh.f32 %v632_v55  ;;  %v561_v59 = vpop.permute.xlu0 %560 }
  0xbd   : > { %v412_v60 = vpop.permute.xlu1 %411  ;;  %v1863_v61 = vpop.eup %1862  ;;  %v629_v62 = vadd.f32 %v561_v59, %v501_v56  ;;  %v630_v63 = vadd.f32 %v561_v59, %v502_v57 }
  0xbe   : > { %815 = vmatprep.subr.mxu0 %v1863_v61  ;;  %1792 = vmatprep.subr.mxu1 %v1863_v61  ;;  %v497_v10 = vmul.f32 %v2366_v5, %v412_v60  ;;  %v498_v11 = vmul.f32 %v2368_v6, %v412_v60 }
  0xbf   : > { %1876 = vtanh.f32 %v629_v62  ;;  %816 = vmatpush1.msra.mxu0 %v1861_v58  ;;  %1808 = vmatpush1.msra.mxu1 %v1861_v58 }
  0xc0   : > { %v1865_v2 = vpop.eup %1864  ;;  %1878 = vtanh.f32 %v630_v63  ;;  %v556_v3 = vpop.permute.xlu0 %555 }
  0xc1   : > { %v407_v4 = vpop.permute.xlu1 %406  ;;  %v1867_v7 = vpop.eup %1866  ;;  %v627_v8 = vadd.f32 %v556_v3, %v499_v0  ;;  %v628_v9 = vadd.f32 %v556_v3, %v500_v1 }
  0xc2   : > { %817 = vmatprep.subr.mxu0 %v1867_v7  ;;  %1793 = vmatprep.subr.mxu1 %v1867_v7  ;;  %v496_v13 = vmul.f32 %v2368_v6, %v407_v4  ;;  %v495_v17 = vmul.f32 %v2366_v5, %v407_v4 }
  0xc3   : > { %1880 = vtanh.f32 %v627_v8  ;;  %818 = vmatpush1.msra.mxu0 %v1865_v2  ;;  %1809 = vmatpush1.msra.mxu1 %v1865_v2 }
  0xc4   : > { %v1869_v12 = vpop.eup %1868  ;;  %1882 = vtanh.f32 %v628_v9  ;;  %v551_v14 = vpop.permute.xlu0 %550 }
  0xc5   : > { %v546_v15 = vpop.permute.xlu1 %545  ;;  %v1871_v16 = vpop.eup %1870  ;;  %v625_v18 = vadd.f32 %v551_v14, %v497_v10  ;;  %v626_v19 = vadd.f32 %v551_v14, %v498_v11 }
  0xc6   : > { %v624_v20 = vadd.f32 %v546_v15, %v496_v13  ;;  %819 = vmatprep.subr.mxu0 %v1871_v16  ;;  %1794 = vmatprep.subr.mxu1 %v1871_v16  ;;  %v623_v21 = vadd.f32 %v546_v15, %v495_v17 }
  0xc7   : > { %1884 = vtanh.f32 %v625_v18  ;;  %820 = vmatpush1.msra.mxu0 %v1869_v12  ;;  %1810 = vmatpush1.msra.mxu1 %v1869_v12 }
  0xc8   : > { %v1873_v22 = vpop.eup %1872  ;;  %1886 = vtanh.f32 %v626_v19  ;;  %v797_v63 = vpop.permute.xlu0 %796 }
  0xc9   : > { %v1875_v23 = vpop.eup %1874  ;;  %1888 = vtanh.f32 %v624_v20  ;;  %v792_v2 = vpop.permute.xlu1 %791 }
  0xca   : > { %821 = vmatprep.subr.mxu0 %v1875_v23  ;;  %1795 = vmatprep.subr.mxu1 %v1875_v23  ;;  %1890 = vtanh.f32 %v623_v21 }
  0xcb   : > { %822 = vmatpush1.msra.mxu0 %v1873_v22  ;;  %1811 = vmatpush1.msra.mxu1 %v1873_v22 }
  0xcc   : > { %v1877_v6 = vpop.eup %1876  ;;  %v787_v8 = vpop.permute.xlu0 %786 }
  0xcd   : > { %v1879_v5 = vpop.eup %1878  ;;  %v782_v10 = vpop.permute.xlu1 %781 }
  0xce   : > { %823 = vmatprep.subr.mxu0 %v1879_v5  ;;  %1796 = vmatprep.subr.mxu1 %v1879_v5 }
  0xcf   : > { %824 = vmatpush1.msra.mxu0 %v1877_v6  ;;  %1812 = vmatpush1.msra.mxu1 %v1877_v6 }
  0xd0   : > { %v1881_v24 = vpop.eup %1880  ;;  %v777_v14 = vpop.permute.xlu0 %776 }
  0xd1   : > { %v1883_v25 = vpop.eup %1882  ;;  %v772_v17 = vpop.permute.xlu1 %771 }
  0xd2   : > { %825 = vmatprep.subr.mxu0 %v1883_v25  ;;  %1797 = vmatprep.subr.mxu1 %v1883_v25 }
  0xd3   : > { %826 = vmatpush1.msra.mxu0 %v1881_v24  ;;  %1813 = vmatpush1.msra.mxu1 %v1881_v24 }
  0xd4   : > { %v1885_v26 = vpop.eup %1884  ;;  %v767_v23 = vpop.permute.xlu0 %766 }
  0xd5   : > { %v1887_v27 = vpop.eup %1886  ;;  %v762_v24 = vpop.permute.xlu1 %761 }
  0xd6   : > { %827 = vmatprep.subr.mxu0 %v1887_v27  ;;  %1798 = vmatprep.subr.mxu1 %v1887_v27  ;;  %v1889_v28 = vpop.eup %1888 }
  0xd7   : > { %828 = vmatpush1.msra.mxu0 %v1885_v26  ;;  %1814 = vmatpush1.msra.mxu1 %v1885_v26  ;;  %v1891_v31 = vpop.eup %1890 }
  0xd8   : > { %829 = vmatprep.subr.mxu0 %v1889_v28  ;;  %1799 = vmatprep.subr.mxu1 %v1889_v28 }
  0xd9   : > { %830 = vmatpush1.msra.mxu0 %v1891_v31  ;;  %1815 = vmatpush1.msra.mxu1 %v1891_v31 }
  0xda   : > { %864 = vmatmul.mubr.f32.vlgmr.msra.gmra.mxu0 %v687_v29  ;;  %912 = vmatmul.mubr.f32.vlgmr.msra.gmra.mxu1 %v695_v30  ;;  %v757_v30 = vpop.permute.xlu0 %756 }
  0xdb   : > { %869 = vmatprep.mubr.f32.mxu0 %v2101_v43  ;;  %917 = vmatprep.mubr.f32.mxu1 %v2101_v43 }
  0xde   : > { %870 = vmatmul.mubr.f32.gmra.mxu0 %v688_v32  ;;  %918 = vmatmul.mubr.f32.gmra.mxu1 %v696_v33 }
  0xdf   : > { %875 = vmatprep.mubr.f32.mxu0 %v2101_v43  ;;  %923 = vmatprep.mubr.f32.mxu1 %v2101_v43 }
  0xe2   : > { %876 = vmatmul.mubr.f32.gmra.mxu0 %v689_v34  ;;  %924 = vmatmul.mubr.f32.gmra.mxu1 %v697_v35  ;;  %v752_v34 = vpop.permute.xlu1 %751 }
  0xe3   : > { %881 = vmatprep.mubr.f32.mxu0 %v2101_v43  ;;  %929 = vmatprep.mubr.f32.mxu1 %v2101_v43 }
  0xe6   : > { %882 = vmatmul.mubr.f32.gmra.mxu0 %v690_v36  ;;  %930 = vmatmul.mubr.f32.gmra.mxu1 %v698_v37 }
  0xe7   : > { %887 = vmatprep.mubr.f32.mxu0 %v2101_v43  ;;  %935 = vmatprep.mubr.f32.mxu1 %v2101_v43 }
  0xea   : > { %888 = vmatmul.mubr.f32.gmra.mxu0 %v691_v38  ;;  %936 = vmatmul.mubr.f32.gmra.mxu1 %v699_v39 }
  0xeb   : > { %893 = vmatprep.mubr.f32.mxu0 %v2101_v43  ;;  %941 = vmatprep.mubr.f32.mxu1 %v2101_v43 }
  0xee   : > { %894 = vmatmul.mubr.f32.gmra.mxu0 %v692_v40  ;;  %942 = vmatmul.mubr.f32.gmra.mxu1 %v700_v41  ;;  %v747_v40 = vpop.permute.xlu0 %746 }
  0xef   : > { %899 = vmatprep.mubr.f32.mxu0 %v2101_v43  ;;  %947 = vmatprep.mubr.f32.mxu1 %v2101_v43 }
  0xf2   : > { %900 = vmatmul.mubr.f32.gmra.mxu0 %v693_v42  ;;  %948 = vmatmul.mubr.f32.gmra.mxu1 %v701_v44 }
  0xf3   : > { %905 = vmatprep.mubr.f32.mxu0 %v2101_v43  ;;  %953 = vmatprep.mubr.f32.mxu1 %v2101_v43 }
  0xf6   : > { %906 = vmatmul.mubr.f32.gmra.mxu0 %v694_v45  ;;  %954 = vmatmul.mubr.f32.gmra.mxu1 %v702_v46  ;;  %v742_v45 = vpop.permute.xlu1 %741 }
  0xf7   : > { %1168 = vmatprep.mubr.f32.mxu1 %v2101_v43  ;;  %1473 = vmatprep.mubr.f32.mxu0 %v2101_v43 }
 0x19a   : > { %v2523_v47 = vpop.f32.mrf.mxu0  ;;  %v2525_v48 = vpop.f32.mrf.mxu1 }
 0x19b   : > { %v914_v41 = vadd.f32 %v2525_v48, %v762_v24 }
 0x19c   : > { %v2527_v49 = vpop.f32.mrf.mxu0  ;;  %v2529_v50 = vpop.f32.mrf.mxu1 }
 0x19d   : > { %v916_v39 = vadd.f32 %v2529_v50, %v762_v24 }
 0x19e   : > { %v2531_v51 = vpop.f32.mrf.mxu0  ;;  %v919_v52 = vpop.f32.mrf.mxu1 }
 0x19f   : > { %v920_v37 = vadd.f32 %v919_v52, %v767_v23 }
 0x1a0   : > { %v2533_v53 = vpop.f32.mrf.mxu0  ;;  %v921_v54 = vpop.f32.mrf.mxu1 }
 0x1a1   : > { %v922_v36 = vadd.f32 %v921_v54, %v767_v23 }
 0x1a2   : > { %v2535_v55 = vpop.f32.mrf.mxu0  ;;  %v925_v56 = vpop.f32.mrf.mxu1 }
 0x1a3   : > { %v926_v35 = vadd.f32 %v925_v56, %v772_v17 }
 0x1a4   : > { %v2537_v57 = vpop.f32.mrf.mxu0  ;;  %v927_v58 = vpop.f32.mrf.mxu1 }
 0x1a5   : > { %v928_v33 = vadd.f32 %v927_v58, %v772_v17 }
 0x1a6   : > { %v2539_v59 = vpop.f32.mrf.mxu0  ;;  %v931_v60 = vpop.f32.mrf.mxu1 }
 0x1a7   : > { %v932_v31 = vadd.f32 %v931_v60, %v777_v14 }
 0x1a8   : > { %v2541_v61 = vpop.f32.mrf.mxu0  ;;  %v933_v62 = vpop.f32.mrf.mxu1 }
 0x1a9   : > { %v934_v29 = vadd.f32 %v933_v62, %v777_v14  ;;  %v737_v62 = vpop.permute.xlu0 %736 }
 0x1aa   : > { %v2543_v0 = vpop.f32.mrf.mxu0  ;;  %v937_v1 = vpop.f32.mrf.mxu1 }
 0x1ab   : > { %v938_v28 = vadd.f32 %v937_v1, %v782_v10 }
 0x1ac   : > { %v939_v3 = vpop.f32.mrf.mxu1  ;;  %v2545_v4 = vpop.f32.mrf.mxu0 }
 0x1ad   : > { %v940_v27 = vadd.f32 %v939_v3, %v782_v10  ;;  %v886_v10 = vadd.f32 %v2541_v61, %v737_v62 }
 0x1ae   : > { %v943_v7 = vpop.f32.mrf.mxu1  ;;  %v2547_v11 = vpop.f32.mrf.mxu0 }
 0x1af   : > { %v944_v25 = vadd.f32 %v943_v7, %v787_v8  ;;  %v732_v7 = vpop.permute.xlu1 %731 }
 0x1b0   : > { %v945_v9 = vpop.f32.mrf.mxu1  ;;  %v897_v15 = vpop.f32.mrf.mxu0 }
 0x1b1   : > { %v946_v5 = vadd.f32 %v945_v9, %v787_v8  ;;  %v898_v60 = vadd.f32 %v897_v15, %v747_v40  ;;  %v890_v8 = vadd.f32 %v2543_v0, %v742_v45  ;;  %v727_v15 = vpop.permute.xlu0 %726  ;;  %v878_v0 = vadd.f32 %v2535_v55, %v732_v7 }
 0x1b2   : > { %v949_v12 = vpop.f32.mrf.mxu1  ;;  %v901_v19 = vpop.f32.mrf.mxu0  ;;  %v874_v61 = vadd.f32 %v2533_v53, %v727_v15 }
 0x1b3   : > { %v950_v6 = vadd.f32 %v949_v12, %v792_v2  ;;  %v902_v58 = vadd.f32 %v901_v19, %v752_v34 }
 0x1b4   : > { %v951_v13 = vpop.f32.mrf.mxu1  ;;  %v903_v26 = vpop.f32.mrf.mxu0 }
 0x1b5   : > { %v952_v22 = vadd.f32 %v951_v13, %v792_v2  ;;  %v904_v54 = vadd.f32 %v903_v26, %v752_v34  ;;  %v892_v2 = vadd.f32 %v2545_v4, %v742_v45  ;;  %v880_v4 = vadd.f32 %v2537_v57, %v732_v7  ;;  %v994_v34 = vld [vmem:[%s2788_s5 + $0x10] sm:$0xff]  ;;  %v1004_v45 = vld [vmem:[%s2788_s5 + $0x60] sm:$0xff] }
 0x1b6   : > { %v955_v16 = vpop.f32.mrf.mxu1  ;;  %v907_v32 = vpop.f32.mrf.mxu0 }
 0x1b7   : > { %v956_v20 = vadd.f32 %v955_v16, %v797_v63  ;;  %v908_v46 = vadd.f32 %v907_v32, %v757_v30 }
 0x1b8   : > { %v957_v18 = vpop.f32.mrf.mxu1  ;;  %v909_v38 = vpop.f32.mrf.mxu0 }
 0x1b9   : > { %v958_v21 = vadd.f32 %v957_v18, %v797_v63  ;;  %v910_v42 = vadd.f32 %v909_v38, %v757_v30  ;;  %v896_v63 = vadd.f32 %v2547_v11, %v747_v40  ;;  %v884_v11 = vadd.f32 %v2539_v59, %v737_v62  ;;  %v722_v59 = vpop.permute.xlu1 %721  ;;  %v998_v38 = vld [vmem:[%s2788_s5 + $0x30] sm:$0xff]  ;;  %v1000_v40 = vld [vmem:[%s2788_s5 + $0x40] sm:$0xff] }
 0x1ba   : > { %v872_v18 = vadd.f32 %v2531_v51, %v727_v15  ;;  %v868_v19 = vadd.f32 %v2527_v49, %v722_v59  ;;  %v866_v55 = vadd.f32 %v2523_v47, %v722_v59 }
 0x1bb   : > { %1892 = vtanh.f32 %v958_v21 }
 0x1bc   : > { %1894 = vtanh.f32 %v956_v20 }
 0x1bd   : > { %1896 = vtanh.f32 %v952_v22 }
 0x1be   : > { %1898 = vtanh.f32 %v950_v6 }
 0x1bf   : > { %1900 = vtanh.f32 %v946_v5 }
 0x1c0   : > { %1902 = vtanh.f32 %v944_v25 }
 0x1c1   : > { %1904 = vtanh.f32 %v940_v27 }
 0x1c2   : > { %1906 = vtanh.f32 %v938_v28 }
 0x1c3   : > { %1908 = vtanh.f32 %v934_v29 }
 0x1c4   : > { %1910 = vtanh.f32 %v932_v31  ;;  %v992_v31 = vld [vmem:[%s2788_s5] sm:$0xff] }
 0x1c5   : > { %1912 = vtanh.f32 %v928_v33  ;;  %v993_v33 = vld [vmem:[%s2788_s5 + $0x8] sm:$0xff] }
 0x1c6   : > { %1914 = vtanh.f32 %v926_v35  ;;  %v995_v35 = vld [vmem:[%s2788_s5 + $0x18] sm:$0xff] }
 0x1c7   : > { %1916 = vtanh.f32 %v922_v36  ;;  %v996_v36 = vld [vmem:[%s2788_s5 + $0x20] sm:$0xff] }
 0x1c8   : > { %v1893_v44 = vpop.eup %1892  ;;  %1918 = vtanh.f32 %v920_v37  ;;  %v997_v37 = vld [vmem:[%s2788_s5 + $0x28] sm:$0xff] }
 0x1c9   : > { %v1895_v56 = vpop.eup %1894  ;;  %1920 = vtanh.f32 %v916_v39  ;;  %1104 = vmatprep.subr.mxu1 %v1893_v44  ;;  %v999_v39 = vld [vmem:[%s2788_s5 + $0x38] sm:$0xff] }
 0x1ca   : > { %v1897_v52 = vpop.eup %1896  ;;  %1922 = vtanh.f32 %v914_v41  ;;  %1105 = vmatpush1.msra.mxu1 %v1895_v56  ;;  %v1001_v41 = vld [vmem:[%s2788_s5 + $0x48] sm:$0xff]  ;;  %v1003_v44 = vld [vmem:[%s2788_s5 + $0x58] sm:$0xff]  ;;  %v1006_v56 = vld [vmem:[%s2788_s5 + $0x70] sm:$0xff] }
 0x1cb   : > { %v1899_v50 = vpop.eup %1898  ;;  %1924 = vtanh.f32 %v910_v42  ;;  %1106 = vmatprep.subr.mxu1 %v1897_v52  ;;  %v1002_v42 = vld [vmem:[%s2788_s5 + $0x50] sm:$0xff] }
 0x1cc   : > { %v1901_v48 = vpop.eup %1900  ;;  %1926 = vtanh.f32 %v908_v46  ;;  %1107 = vmatpush1.msra.mxu1 %v1899_v50  ;;  %v1005_v46 = vld [vmem:[%s2788_s5 + $0x68] sm:$0xff] }
 0x1cd   : > { %v1903_v1 = vpop.eup %1902  ;;  %1928 = vtanh.f32 %v904_v54  ;;  %1108 = vmatprep.subr.mxu1 %v1901_v48  ;;  %v1007_v54 = vld [vmem:[%s2788_s5 + $0x78] sm:$0xff] }
 0x1ce   : > { %v1905_v3 = vpop.eup %1904  ;;  %1930 = vtanh.f32 %v902_v58  ;;  %1109 = vmatpush1.msra.mxu1 %v1903_v1 }
 0x1cf   : > { %v1907_v9 = vpop.eup %1906  ;;  %1932 = vtanh.f32 %v898_v60  ;;  %1110 = vmatprep.subr.mxu1 %v1905_v3 }
 0x1d0   : > { %v1909_v12 = vpop.eup %1908  ;;  %1934 = vtanh.f32 %v896_v63  ;;  %1111 = vmatpush1.msra.mxu1 %v1907_v9 }
 0x1d1   : > { %v1911_v13 = vpop.eup %1910  ;;  %1936 = vtanh.f32 %v892_v2  ;;  %1112 = vmatprep.subr.mxu1 %v1909_v12 }
 0x1d2   : > { %v1913_v14 = vpop.eup %1912  ;;  %1938 = vtanh.f32 %v890_v8  ;;  %1113 = vmatpush1.msra.mxu1 %v1911_v13 }
 0x1d3   : > { %v1915_v16 = vpop.eup %1914  ;;  %1940 = vtanh.f32 %v886_v10  ;;  %1114 = vmatprep.subr.mxu1 %v1913_v14 }
 0x1d4   : > { %v1917_v17 = vpop.eup %1916  ;;  %1942 = vtanh.f32 %v884_v11  ;;  %1115 = vmatpush1.msra.mxu1 %v1915_v16 }
 0x1d5   : > { %v1919_v57 = vpop.eup %1918  ;;  %1944 = vtanh.f32 %v880_v4  ;;  %1116 = vmatprep.subr.mxu1 %v1917_v17  ;;  %v1102_v17 = vpop.permute.xlu0 %1101 }
 0x1d6   : > { %v1921_v20 = vpop.eup %1920  ;;  %1946 = vtanh.f32 %v878_v0  ;;  %1117 = vmatpush1.msra.mxu1 %v1919_v57 }
 0x1d7   : > { %v1923_v21 = vpop.eup %1922  ;;  %1948 = vtanh.f32 %v874_v61  ;;  %1118 = vmatprep.subr.mxu1 %v1921_v20 }
 0x1d8   : > { %v1925_v53 = vpop.eup %1924  ;;  %1950 = vtanh.f32 %v872_v18  ;;  %1119 = vmatpush1.msra.mxu1 %v1923_v21  ;;  %v1097_v18 = vpop.permute.xlu1 %1096 }
 0x1d9   : > { %v1927_v22 = vpop.eup %1926  ;;  %1952 = vtanh.f32 %v868_v19  ;;  %1120 = vmatprep.subr.mxu1 %v1925_v53  ;;  %v1092_v20 = vpop.permute.xlu0 %1091 }
 0x1da   : > { %v1929_v51 = vpop.eup %1928  ;;  %1954 = vtanh.f32 %v866_v55  ;;  %1121 = vmatpush1.msra.mxu1 %v1927_v22 }
 0x1db   : > { %v1931_v49 = vpop.eup %1930  ;;  %1122 = vmatprep.subr.mxu1 %v1929_v51 }
 0x1dc   : > { %v1933_v23 = vpop.eup %1932  ;;  %1123 = vmatpush1.msra.mxu1 %v1931_v49  ;;  %v1087_v21 = vpop.permute.xlu1 %1086 }
 0x1dd   : > { %v1935_v6 = vpop.eup %1934  ;;  %1124 = vmatprep.subr.mxu1 %v1933_v23  ;;  %v1082_v51 = vpop.permute.xlu0 %1081 }
 0x1de   : > { %v1937_v47 = vpop.eup %1936  ;;  %1125 = vmatpush1.msra.mxu1 %v1935_v6 }
 0x1df   : > { %v1939_v5 = vpop.eup %1938  ;;  %1126 = vmatprep.subr.mxu1 %v1937_v47 }
 0x1e0   : > { %v1941_v24 = vpop.eup %1940  ;;  %1127 = vmatpush1.msra.mxu1 %v1939_v5  ;;  %v1077_v23 = vpop.permute.xlu1 %1076 }
 0x1e1   : > { %v1943_v25 = vpop.eup %1942  ;;  %1128 = vmatprep.subr.mxu1 %v1941_v24 }
 0x1e2   : > { %v1945_v26 = vpop.eup %1944  ;;  %1129 = vmatpush1.msra.mxu1 %v1943_v25 }
 0x1e3   : > { %v1947_v27 = vpop.eup %1946  ;;  %1130 = vmatprep.subr.mxu1 %v1945_v26  ;;  %v1072_v26 = vpop.permute.xlu0 %1071 }
 0x1e4   : > { %v1949_v28 = vpop.eup %1948  ;;  %1131 = vmatpush1.msra.mxu1 %v1947_v27 }
 0x1e5   : > { %v1951_v29 = vpop.eup %1950  ;;  %1132 = vmatprep.subr.mxu1 %v1949_v28 }
 0x1e6   : > { %v1953_v30 = vpop.eup %1952  ;;  %1133 = vmatpush1.msra.mxu1 %v1951_v29  ;;  %v1067_v29 = vpop.permute.xlu1 %1066 }
 0x1e7   : > { %v1955_v32 = vpop.eup %1954  ;;  %1134 = vmatprep.subr.mxu1 %v1953_v30 }
 0x1e8   : > { %1135 = vmatpush1.msra.mxu1 %v1955_v32 }
 0x1e9   : > { %1169 = vmatmul.mubr.f32.vlgmr.msra.gmra.mxu1 %v992_v31 }
 0x1ea   : > { %1174 = vmatprep.mubr.f32.mxu1 %v2101_v43 }
 0x1ed   : > { %1175 = vmatmul.mubr.f32.gmra.mxu1 %v993_v33 }
 0x1ee   : > { %1180 = vmatprep.mubr.f32.mxu1 %v2101_v43 }
 0x1f1   : > { %1181 = vmatmul.mubr.f32.gmra.mxu1 %v994_v34  ;;  %v1062_v34 = vpop.permute.xlu0 %1061 }
 0x1f2   : > { %1186 = vmatprep.mubr.f32.mxu1 %v2101_v43 }
 0x1f5   : > { %1187 = vmatmul.mubr.f32.gmra.mxu1 %v995_v35 }
 0x1f6   : > { %1192 = vmatprep.mubr.f32.mxu1 %v2101_v43 }
 0x1f9   : > { %1193 = vmatmul.mubr.f32.gmra.mxu1 %v996_v36 }
 0x1fa   : > { %1198 = vmatprep.mubr.f32.mxu1 %v2101_v43 }
 0x1fd   : > { %1199 = vmatmul.mubr.f32.gmra.mxu1 %v997_v37  ;;  %v1057_v37 = vpop.permute.xlu1 %1056 }
 0x1fe   : > { %1204 = vmatprep.mubr.f32.mxu1 %v2101_v43 }
 0x201   : > { %1205 = vmatmul.mubr.f32.gmra.mxu1 %v998_v38 }
 0x202   : > { %1210 = vmatprep.mubr.f32.mxu1 %v2101_v43 }
 0x205   : > { %1211 = vmatmul.mubr.f32.gmra.mxu1 %v999_v39 }
 0x206   : > { %1216 = vmatprep.mubr.f32.mxu1 %v2101_v43 }
 0x209   : > { %1217 = vmatmul.mubr.f32.gmra.mxu1 %v1000_v40 }
 0x20a   : > { %1222 = vmatprep.mubr.f32.mxu1 %v2101_v43 }
 0x20d   : > { %1223 = vmatmul.mubr.f32.gmra.mxu1 %v1001_v41 }
 0x20e   : > { %1228 = vmatprep.mubr.f32.mxu1 %v2101_v43 }
 0x211   : > { %1229 = vmatmul.mubr.f32.gmra.mxu1 %v1002_v42  ;;  %v1052_v42 = vpop.permute.xlu0 %1051 }
 0x212   : > { %1234 = vmatprep.mubr.f32.mxu1 %v2101_v43 }
 0x215   : > { %1235 = vmatmul.mubr.f32.gmra.mxu1 %v1003_v44 }
 0x216   : > { %1240 = vmatprep.mubr.f32.mxu1 %v2101_v43 }
 0x219   : > { %1241 = vmatmul.mubr.f32.gmra.mxu1 %v1004_v45 }
 0x21a   : > { %1246 = vmatprep.mubr.f32.mxu1 %v2101_v43 }
 0x21d   : > { %1247 = vmatmul.mubr.f32.gmra.mxu1 %v1005_v46 }
 0x21e   : > { %1252 = vmatprep.mubr.f32.mxu1 %v2101_v43 }
 0x221   : > { %1253 = vmatmul.mubr.f32.gmra.mxu1 %v1006_v56  ;;  %v1047_v56 = vpop.permute.xlu1 %1046 }
 0x222   : > { %1258 = vmatprep.mubr.f32.mxu1 %v2101_v43 }
 0x225   : > { %1259 = vmatmul.mubr.f32.gmra.mxu1 %v1007_v54 }
 0x226   : > { %1673 = vmatprep.mubr.f32.mxu1 %v2101_v43 }
 0x2a9   : > { %v2626_v52 = vpop.f32.mrf.mxu1 }
 0x2ab   : > { %v2628_v58 = vpop.f32.mrf.mxu1 }
 0x2ad   : > { %v2630_v50 = vpop.f32.mrf.mxu1 }
 0x2af   : > { %v2632_v60 = vpop.f32.mrf.mxu1 }
 0x2b1   : > { %v2634_v48 = vpop.f32.mrf.mxu1 }
 0x2b3   : > { %v2636_v62 = vpop.f32.mrf.mxu1 }
 0x2b5   : > { %v2638_v63 = vpop.f32.mrf.mxu1 }
 0x2b7   : > { %v2640_v1 = vpop.f32.mrf.mxu1 }
 0x2b9   : > { %v2642_v2 = vpop.f32.mrf.mxu1 }
 0x2bb   : > { %v2644_v3 = vpop.f32.mrf.mxu1 }
 0x2bd   : > { %v2646_v7 = vpop.f32.mrf.mxu1 }
 0x2bf   : > { %v2648_v8 = vpop.f32.mrf.mxu1 }
 0x2c1   : > { %v2650_v9 = vpop.f32.mrf.mxu1 }
 0x2c3   : > { %v2652_v10 = vpop.f32.mrf.mxu1 }
 0x2c5   : > { %v1212_v12 = vpop.f32.mrf.mxu1 }
 0x2c6   : > { %v1213_v54 = vadd.f32 %v1212_v12, %v1062_v34  ;;  %v1201_v12 = vadd.f32 %v2646_v7, %v1052_v42 }
 0x2c7   : > { %v1214_v11 = vpop.f32.mrf.mxu1 }
 0x2c8   : > { %v1215_v45 = vadd.f32 %v1214_v11, %v1062_v34 }
 0x2c9   : > { %v1218_v13 = vpop.f32.mrf.mxu1 }
 0x2ca   : > { %v1219_v44 = vadd.f32 %v1218_v13, %v1067_v29  ;;  %v1203_v13 = vadd.f32 %v2648_v8, %v1052_v42  ;;  %v1305_v42 = vld [vmem:[%s2790_s7 + $0x40] sm:$0xff] }
 0x2cb   : > { %v1220_v4 = vpop.f32.mrf.mxu1 }
 0x2cc   : > { %v1221_v41 = vadd.f32 %v1220_v4, %v1067_v29 }
 0x2cd   : > { %v1224_v14 = vpop.f32.mrf.mxu1 }
 0x2ce   : > { %v1225_v40 = vadd.f32 %v1224_v14, %v1072_v26  ;;  %v1207_v14 = vadd.f32 %v2650_v9, %v1057_v37  ;;  %v1037_v9 = vpop.permute.xlu1 %1036 }
 0x2cf   : > { %v1226_v15 = vpop.f32.mrf.mxu1 }
 0x2d0   : > { %v1227_v39 = vadd.f32 %v1226_v15, %v1072_v26 }
 0x2d1   : > { %v1230_v0 = vpop.f32.mrf.mxu1 }
 0x2d2   : > { %v1231_v38 = vadd.f32 %v1230_v0, %v1077_v23  ;;  %v1042_v0 = vpop.permute.xlu0 %1041 }
 0x2d3   : > { %v1232_v16 = vpop.f32.mrf.mxu1  ;;  %v1189_v7 = vadd.f32 %v2638_v63, %v1042_v0  ;;  %v1027_v63 = vpop.permute.xlu1 %1026 }
 0x2d4   : > { %v1233_v36 = vadd.f32 %v1232_v16, %v1077_v23 }
 0x2d5   : > { %v1236_v61 = vpop.f32.mrf.mxu1 }
 0x2d6   : > { %v1237_v35 = vadd.f32 %v1236_v61, %v1082_v51  ;;  %v1209_v61 = vadd.f32 %v2652_v10, %v1057_v37  ;;  %v1197_v10 = vadd.f32 %v2644_v3, %v1047_v56  ;;  %v1185_v3 = vadd.f32 %v2636_v62, %v1037_v9  ;;  %v1300_v37 = vld [vmem:[%s2790_s7 + $0x18] sm:$0xff] }
 0x2d7   : > { %v1238_v59 = vpop.f32.mrf.mxu1 }
 0x2d8   : > { %v1239_v33 = vadd.f32 %v1238_v59, %v1082_v51 }
 0x2d9   : > { %v1242_v57 = vpop.f32.mrf.mxu1 }
 0x2da   : > { %v1243_v32 = vadd.f32 %v1242_v57, %v1087_v21  ;;  %v1191_v57 = vadd.f32 %v2640_v1, %v1042_v0 }
 0x2db   : > { %v1244_v19 = vpop.f32.mrf.mxu1 }
 0x2dc   : > { %v1245_v31 = vadd.f32 %v1244_v19, %v1087_v21  ;;  %v1032_v21 = vpop.permute.xlu0 %1031 }
 0x2dd   : > { %v1248_v55 = vpop.f32.mrf.mxu1  ;;  %v1179_v1 = vadd.f32 %v2632_v60, %v1032_v21  ;;  %v1177_v51 = vadd.f32 %v2630_v50, %v1032_v21 }
 0x2de   : > { %v1249_v30 = vadd.f32 %v1248_v55, %v1092_v20 }
 0x2df   : > { %v1250_v53 = vpop.f32.mrf.mxu1 }
 0x2e0   : > { %v1251_v28 = vadd.f32 %v1250_v53, %v1092_v20 }
 0x2e1   : > { %v1254_v22 = vpop.f32.mrf.mxu1 }
 0x2e2   : > { %v1255_v27 = vadd.f32 %v1254_v22, %v1097_v18 }
 0x2e3   : > { %v1256_v49 = vpop.f32.mrf.mxu1 }
 0x2e4   : > { %v1257_v24 = vadd.f32 %v1256_v49, %v1097_v18  ;;  %v1195_v18 = vadd.f32 %v2642_v2, %v1047_v56  ;;  %v1183_v2 = vadd.f32 %v2634_v48, %v1037_v9  ;;  %v1173_v49 = vadd.f32 %v2628_v58, %v1027_v63  ;;  %v1309_v56 = vld [vmem:[%s2790_s7 + $0x60] sm:$0xff] }
 0x2e5   : > { %v1260_v6 = vpop.f32.mrf.mxu1  ;;  %v1171_v48 = vadd.f32 %v2626_v52, %v1027_v63  ;;  %v1402_v63 = vpop.permute.xlu1 %1401 }
 0x2e6   : > { %v1261_v47 = vadd.f32 %v1260_v6, %v1102_v17 }
 0x2e7   : > { %v1262_v5 = vpop.f32.mrf.mxu1 }
 0x2e8   : > { %v1263_v25 = vadd.f32 %v1262_v5, %v1102_v17 }
 0x2ea   : > { %1956 = vtanh.f32 %v1263_v25 }
 0x2eb   : > { %1958 = vtanh.f32 %v1261_v47 }
 0x2ec   : > { %1960 = vtanh.f32 %v1257_v24 }
 0x2ed   : > { %1962 = vtanh.f32 %v1255_v27 }
 0x2ee   : > { %1964 = vtanh.f32 %v1251_v28 }
 0x2ef   : > { %1966 = vtanh.f32 %v1249_v30 }
 0x2f0   : > { %1968 = vtanh.f32 %v1245_v31 }
 0x2f1   : > { %1970 = vtanh.f32 %v1243_v32 }
 0x2f2   : > { %1972 = vtanh.f32 %v1239_v33  ;;  %v1297_v33 = vld [vmem:[%s2790_s7] sm:$0xff] }
 0x2f3   : > { %1974 = vtanh.f32 %v1237_v35  ;;  %v1298_v35 = vld [vmem:[%s2790_s7 + $0x8] sm:$0xff] }
 0x2f4   : > { %1976 = vtanh.f32 %v1233_v36  ;;  %v1299_v36 = vld [vmem:[%s2790_s7 + $0x10] sm:$0xff] }
 0x2f5   : > { %1978 = vtanh.f32 %v1231_v38  ;;  %v1301_v38 = vld [vmem:[%s2790_s7 + $0x20] sm:$0xff] }
 0x2f6   : > { %1980 = vtanh.f32 %v1227_v39  ;;  %v1302_v39 = vld [vmem:[%s2790_s7 + $0x28] sm:$0xff] }
 0x2f7   : > { %v1957_v46 = vpop.eup %1956  ;;  %1982 = vtanh.f32 %v1225_v40  ;;  %v1303_v40 = vld [vmem:[%s2790_s7 + $0x30] sm:$0xff] }
 0x2f8   : > { %v1959_v16 = vpop.eup %1958  ;;  %1984 = vtanh.f32 %v1221_v41  ;;  %1409 = vmatprep.subr.mxu0 %v1957_v46  ;;  %v1304_v41 = vld [vmem:[%s2790_s7 + $0x38] sm:$0xff] }
 0x2f9   : > { %v1961_v15 = vpop.eup %1960  ;;  %1986 = vtanh.f32 %v1219_v44  ;;  %1410 = vmatpush1.msra.mxu0 %v1959_v16  ;;  %v1306_v44 = vld [vmem:[%s2790_s7 + $0x48] sm:$0xff]  ;;  %v1308_v46 = vld [vmem:[%s2790_s7 + $0x58] sm:$0xff]  ;;  %v1311_v16 = vld [vmem:[%s2790_s7 + $0x70] sm:$0xff] }
 0x2fa   : > { %v1963_v4 = vpop.eup %1962  ;;  %1988 = vtanh.f32 %v1215_v45  ;;  %1411 = vmatprep.subr.mxu0 %v1961_v15  ;;  %v1307_v45 = vld [vmem:[%s2790_s7 + $0x50] sm:$0xff] }
 0x2fb   : > { %v1965_v11 = vpop.eup %1964  ;;  %1990 = vtanh.f32 %v1213_v54  ;;  %1412 = vmatpush1.msra.mxu0 %v1963_v4  ;;  %v1310_v54 = vld [vmem:[%s2790_s7 + $0x68] sm:$0xff] }
 0x2fc   : > { %v1967_v17 = vpop.eup %1966  ;;  %1992 = vtanh.f32 %v1209_v61  ;;  %1413 = vmatprep.subr.mxu0 %v1965_v11  ;;  %v1312_v61 = vld [vmem:[%s2790_s7 + $0x78] sm:$0xff] }
 0x2fd   : > { %v1969_v59 = vpop.eup %1968  ;;  %1994 = vtanh.f32 %v1207_v14  ;;  %1414 = vmatpush1.msra.mxu0 %v1967_v17 }
 0x2fe   : > { %v1971_v8 = vpop.eup %1970  ;;  %1996 = vtanh.f32 %v1203_v13  ;;  %1415 = vmatprep.subr.mxu0 %v1969_v59 }
 0x2ff   : > { %v1973_v19 = vpop.eup %1972  ;;  %1998 = vtanh.f32 %v1201_v12  ;;  %1416 = vmatpush1.msra.mxu0 %v1971_v8 }
 0x300   : > { %v1975_v20 = vpop.eup %1974  ;;  %2000 = vtanh.f32 %v1197_v10  ;;  %1417 = vmatprep.subr.mxu0 %v1973_v19 }
 0x301   : > { %v1977_v55 = vpop.eup %1976  ;;  %2002 = vtanh.f32 %v1195_v18  ;;  %1418 = vmatpush1.msra.mxu0 %v1975_v20 }
 0x302   : > { %v1979_v53 = vpop.eup %1978  ;;  %2004 = vtanh.f32 %v1191_v57  ;;  %1419 = vmatprep.subr.mxu0 %v1977_v55 }
 0x303   : > { %v1981_v22 = vpop.eup %1980  ;;  %2006 = vtanh.f32 %v1189_v7  ;;  %1420 = vmatpush1.msra.mxu0 %v1979_v53 }
 0x304   : > { %v1983_v62 = vpop.eup %1982  ;;  %2008 = vtanh.f32 %v1185_v3  ;;  %1421 = vmatprep.subr.mxu0 %v1981_v22 }
 0x305   : > { %v1985_v23 = vpop.eup %1984  ;;  %2010 = vtanh.f32 %v1183_v2  ;;  %1422 = vmatpush1.msra.mxu0 %v1983_v62 }
 0x306   : > { %v1987_v6 = vpop.eup %1986  ;;  %2012 = vtanh.f32 %v1179_v1  ;;  %1423 = vmatprep.subr.mxu0 %v1985_v23  ;;  %v1407_v1 = vpop.permute.xlu0 %1406 }
 0x307   : > { %v1989_v60 = vpop.eup %1988  ;;  %2014 = vtanh.f32 %v1177_v51  ;;  %1424 = vmatpush1.msra.mxu0 %v1987_v6 }
 0x308   : > { %v1991_v47 = vpop.eup %1990  ;;  %2016 = vtanh.f32 %v1173_v49  ;;  %1425 = vmatprep.subr.mxu0 %v1989_v60 }
 0x309   : > { %v1993_v50 = vpop.eup %1992  ;;  %2018 = vtanh.f32 %v1171_v48  ;;  %1426 = vmatpush1.msra.mxu0 %v1991_v47  ;;  %v1392_v48 = vpop.permute.xlu1 %1391 }
 0x30a   : > { %v1995_v58 = vpop.eup %1994  ;;  %1427 = vmatprep.subr.mxu0 %v1993_v50  ;;  %v1397_v49 = vpop.permute.xlu0 %1396 }
 0x30b   : > { %v1997_v5 = vpop.eup %1996  ;;  %1428 = vmatpush1.msra.mxu0 %v1995_v58 }
 0x30c   : > { %v1999_v24 = vpop.eup %1998  ;;  %1429 = vmatprep.subr.mxu0 %v1997_v5 }
 0x30d   : > { %v2001_v52 = vpop.eup %2000  ;;  %1430 = vmatpush1.msra.mxu0 %v1999_v24  ;;  %v1382_v58 = vpop.permute.xlu1 %1381 }
 0x30e   : > { %v2003_v25 = vpop.eup %2002  ;;  %1431 = vmatprep.subr.mxu0 %v2001_v52  ;;  %v1387_v47 = vpop.permute.xlu0 %1386 }
 0x30f   : > { %v2005_v26 = vpop.eup %2004  ;;  %1432 = vmatpush1.msra.mxu0 %v2003_v25 }
 0x310   : > { %v2007_v27 = vpop.eup %2006  ;;  %1433 = vmatprep.subr.mxu0 %v2005_v26 }
 0x311   : > { %v2009_v28 = vpop.eup %2008  ;;  %1434 = vmatpush1.msra.mxu0 %v2007_v27 }
 0x312   : > { %v2011_v29 = vpop.eup %2010  ;;  %1435 = vmatprep.subr.mxu0 %v2009_v28  ;;  %v1377_v27 = vpop.permute.xlu0 %1376 }
 0x313   : > { %v2013_v30 = vpop.eup %2012  ;;  %1436 = vmatpush1.msra.mxu0 %v2011_v29 }
 0x314   : > { %v2015_v31 = vpop.eup %2014  ;;  %1437 = vmatprep.subr.mxu0 %v2013_v30  ;;  %v1372_v30 = vpop.permute.xlu1 %1371 }
 0x315   : > { %v2017_v32 = vpop.eup %2016  ;;  %1438 = vmatpush1.msra.mxu0 %v2015_v31 }
 0x316   : > { %v2019_v34 = vpop.eup %2018  ;;  %1439 = vmatprep.subr.mxu0 %v2017_v32 }
 0x317   : > { %1440 = vmatpush1.msra.mxu0 %v2019_v34 }
 0x318   : > { %1474 = vmatmul.mubr.f32.vlgmr.msra.gmra.mxu0 %v1297_v33 }
 0x319   : > { %1479 = vmatprep.mubr.f32.mxu0 %v2101_v43 }
 0x31c   : > { %1480 = vmatmul.mubr.f32.gmra.mxu0 %v1298_v35  ;;  %v1367_v35 = vpop.permute.xlu0 %1366 }
 0x31d   : > { %1485 = vmatprep.mubr.f32.mxu0 %v2101_v43 }
 0x320   : > { %1486 = vmatmul.mubr.f32.gmra.mxu0 %v1299_v36 }
 0x321   : > { %1491 = vmatprep.mubr.f32.mxu0 %v2101_v43 }
 0x324   : > { %1492 = vmatmul.mubr.f32.gmra.mxu0 %v1300_v37 }
 0x325   : > { %1497 = vmatprep.mubr.f32.mxu0 %v2101_v43 }
 0x328   : > { %1498 = vmatmul.mubr.f32.gmra.mxu0 %v1301_v38  ;;  %v1362_v38 = vpop.permute.xlu1 %1361 }
 0x329   : > { %1503 = vmatprep.mubr.f32.mxu0 %v2101_v43 }
 0x32c   : > { %1504 = vmatmul.mubr.f32.gmra.mxu0 %v1302_v39 }
 0x32d   : > { %1509 = vmatprep.mubr.f32.mxu0 %v2101_v43 }
 0x330   : > { %1510 = vmatmul.mubr.f32.gmra.mxu0 %v1303_v40 }
 0x331   : > { %1515 = vmatprep.mubr.f32.mxu0 %v2101_v43 }
 0x334   : > { %1516 = vmatmul.mubr.f32.gmra.mxu0 %v1304_v41 }
 0x335   : > { %1521 = vmatprep.mubr.f32.mxu0 %v2101_v43 }
 0x338   : > { %1522 = vmatmul.mubr.f32.gmra.mxu0 %v1305_v42 }
 0x339   : > { %1527 = vmatprep.mubr.f32.mxu0 %v2101_v43 }
 0x33c   : > { %1528 = vmatmul.mubr.f32.gmra.mxu0 %v1306_v44  ;;  %v1357_v44 = vpop.permute.xlu0 %1356 }
 0x33d   : > { %1533 = vmatprep.mubr.f32.mxu0 %v2101_v43 }
 0x340   : > { %1534 = vmatmul.mubr.f32.gmra.mxu0 %v1307_v45 }
 0x341   : > { %1539 = vmatprep.mubr.f32.mxu0 %v2101_v43 }
 0x344   : > { %1540 = vmatmul.mubr.f32.gmra.mxu0 %v1308_v46 }
 0x345   : > { %1545 = vmatprep.mubr.f32.mxu0 %v2101_v43 }
 0x348   : > { %1546 = vmatmul.mubr.f32.gmra.mxu0 %v1309_v56 }
 0x349   : > { %1551 = vmatprep.mubr.f32.mxu0 %v2101_v43 }
 0x34c   : > { %1552 = vmatmul.mubr.f32.gmra.mxu0 %v1310_v54  ;;  %v1352_v54 = vpop.permute.xlu1 %1351 }
 0x34d   : > { %1557 = vmatprep.mubr.f32.mxu0 %v2101_v43 }
 0x350   : > { %1558 = vmatmul.mubr.f32.gmra.mxu0 %v1311_v16 }
 0x351   : > { %1563 = vmatprep.mubr.f32.mxu0 %v2101_v43 }
 0x354   : > { %1564 = vmatmul.mubr.f32.gmra.mxu0 %v1312_v61 }
 0x3d8   : > { %v2731_v15 = vpop.f32.mrf.mxu0 }
 0x3da   : > { %v2733_v14 = vpop.f32.mrf.mxu0 }
 0x3dc   : > { %v2735_v4 = vpop.f32.mrf.mxu0 }
 0x3de   : > { %v2737_v13 = vpop.f32.mrf.mxu0 }
 0x3e0   : > { %v2739_v11 = vpop.f32.mrf.mxu0 }
 0x3e2   : > { %v2741_v0 = vpop.f32.mrf.mxu0 }
 0x3e4   : > { %v2743_v12 = vpop.f32.mrf.mxu0 }
 0x3e6   : > { %v2745_v43 = vpop.f32.mrf.mxu0 }
 0x3e8   : > { %v2747_v17 = vpop.f32.mrf.mxu0 }
 0x3ea   : > { %v2749_v10 = vpop.f32.mrf.mxu0 }
 0x3ec   : > { %v2751_v59 = vpop.f32.mrf.mxu0 }
 0x3ee   : > { %v2753_v9 = vpop.f32.mrf.mxu0 }
 0x3f0   : > { %v2755_v18 = vpop.f32.mrf.mxu0 }
 0x3f2   : > { %v2757_v8 = vpop.f32.mrf.mxu0 }
 0x3f4   : > { %v1517_v57 = vpop.f32.mrf.mxu0 }
 0x3f5   : > { %v1518_v16 = vadd.f32 %v1517_v57, %v1367_v35  ;;  %v1506_v57 = vadd.f32 %v2751_v59, %v1357_v44 }
 0x3f6   : > { %v1519_v19 = vpop.f32.mrf.mxu0 }
 0x3f7   : > { %v1520_v46 = vadd.f32 %v1519_v19, %v1367_v35 }
 0x3f8   : > { %v1523_v7 = vpop.f32.mrf.mxu0 }
 0x3f9   : > { %v1524_v45 = vadd.f32 %v1523_v7, %v1372_v30  ;;  %v1508_v7 = vadd.f32 %v2753_v9, %v1357_v44 }
 0x3fa   : > { %v1525_v20 = vpop.f32.mrf.mxu0 }
 0x3fb   : > { %v1526_v42 = vadd.f32 %v1525_v20, %v1372_v30 }
 0x3fc   : > { %v1529_v3 = vpop.f32.mrf.mxu0 }
 0x3fd   : > { %v1530_v41 = vadd.f32 %v1529_v3, %v1377_v27  ;;  %v1512_v3 = vadd.f32 %v2755_v18, %v1362_v38  ;;  %v1342_v18 = vpop.permute.xlu1 %1341 }
 0x3fe   : > { %v1531_v55 = vpop.f32.mrf.mxu0 }
 0x3ff   : > { %v1532_v40 = vadd.f32 %v1531_v55, %v1377_v27 }
 0x400   : > { %v1535_v21 = vpop.f32.mrf.mxu0 }
 0x401   : > { %v1536_v39 = vadd.f32 %v1535_v21, %v1382_v58  ;;  %v1347_v21 = vpop.permute.xlu0 %1346 }
 0x402   : > { %v1537_v2 = vpop.f32.mrf.mxu0  ;;  %v1494_v59 = vadd.f32 %v2743_v12, %v1347_v21  ;;  %v1332_v12 = vpop.permute.xlu1 %1331 }
 0x403   : > { %v1538_v37 = vadd.f32 %v1537_v2, %v1382_v58  ;;  %v1514_v2 = vadd.f32 %v2757_v8, %v1362_v38  ;;  %v1502_v8 = vadd.f32 %v2749_v10, %v1352_v54  ;;  %v1490_v10 = vadd.f32 %v2741_v0, %v1342_v18 }
 0x404   : > { %v1541_v53 = vpop.f32.mrf.mxu0 }
 0x405   : > { %v1542_v36 = vadd.f32 %v1541_v53, %v1387_v47 }
 0x406   : > { %v1543_v22 = vpop.f32.mrf.mxu0 }
 0x407   : > { %v1544_v34 = vadd.f32 %v1543_v22, %v1387_v47  ;;  %v1500_v22 = vadd.f32 %v2747_v17, %v1352_v54  ;;  %v1488_v17 = vadd.f32 %v2739_v11, %v1342_v18  ;;  %v1478_v47 = vadd.f32 %v2733_v14, %v1332_v12 }
 0x408   : > { %v1547_v51 = vpop.f32.mrf.mxu0  ;;  %v1476_v11 = vadd.f32 %v2731_v15, %v1332_v12 }
 0x409   : > { %v1548_v33 = vadd.f32 %v1547_v51, %v1392_v48 }
 0x40a   : > { %v1549_v62 = vpop.f32.mrf.mxu0 }
 0x40b   : > { %v1550_v32 = vadd.f32 %v1549_v62, %v1392_v48 }
 0x40c   : > { %v1553_v23 = vpop.f32.mrf.mxu0 }
 0x40d   : > { %v1554_v31 = vadd.f32 %v1553_v23, %v1397_v49  ;;  %v1337_v23 = vpop.permute.xlu0 %1336 }
 0x40e   : > { %v1555_v6 = vpop.f32.mrf.mxu0 }
 0x40f   : > { %v1556_v29 = vadd.f32 %v1555_v6, %v1397_v49 }
 0x410   : > { %v1559_v60 = vpop.f32.mrf.mxu0 }
 0x411   : > { %v1560_v28 = vadd.f32 %v1559_v60, %v1402_v63  ;;  %v1482_v60 = vadd.f32 %v2735_v4, %v1337_v23  ;;  %v1607_v35 = vpop.permute.xlu0 %1606 }
 0x412   : > { %v1561_v50 = vpop.f32.mrf.mxu0 }
 0x413   : > { %v1562_v25 = vadd.f32 %v1561_v50, %v1402_v63  ;;  %v1496_v63 = vadd.f32 %v2745_v43, %v1347_v21  ;;  %v1484_v43 = vadd.f32 %v2737_v13, %v1337_v23 }
 0x414   : > { %v1565_v5 = vpop.f32.mrf.mxu0 }
 0x415   : > { %v1566_v24 = vadd.f32 %v1565_v5, %v1407_v1 }
 0x416   : > { %v1567_v52 = vpop.f32.mrf.mxu0 }
 0x417   : > { %v1568_v26 = vadd.f32 %v1567_v52, %v1407_v1 }
 0x419   : > { %2020 = vtanh.f32 %v1568_v26 }
 0x41a   : > { %2022 = vtanh.f32 %v1566_v24 }
 0x41b   : > { %2024 = vtanh.f32 %v1562_v25 }
 0x41c   : > { %2026 = vtanh.f32 %v1560_v28 }
 0x41d   : > { %2028 = vtanh.f32 %v1556_v29 }
 0x41e   : > { %2030 = vtanh.f32 %v1554_v31 }
 0x41f   : > { %2032 = vtanh.f32 %v1550_v32 }
 0x420   : > { %2034 = vtanh.f32 %v1548_v33  ;;  %v1602_v33 = vld [vmem:[%s2792_s9] sm:$0x3] }
 0x421   : > { %2036 = vtanh.f32 %v1544_v34 }
 0x422   : > { %2038 = vtanh.f32 %v1542_v36 }
 0x423   : > { %2040 = vtanh.f32 %v1538_v37 }
 0x424   : > { %2042 = vtanh.f32 %v1536_v39 }
 0x425   : > { %2044 = vtanh.f32 %v1532_v40 }
 0x426   : > { %v2021_v56 = vpop.eup %2020  ;;  %2046 = vtanh.f32 %v1530_v41 }
 0x427   : > { %v2023_v61 = vpop.eup %2022  ;;  %2048 = vtanh.f32 %v1526_v42  ;;  %1609 = vmatprep.subr.mxu1 %v2021_v56 }
 0x428   : > { %v2025_v55 = vpop.eup %2024  ;;  %2050 = vtanh.f32 %v1524_v45  ;;  %1610 = vmatpush1.msra.mxu1 %v2023_v61 }
 0x429   : > { %v2027_v20 = vpop.eup %2026  ;;  %2052 = vtanh.f32 %v1520_v46  ;;  %1611 = vmatprep.subr.mxu1 %v2025_v55 }
 0x42a   : > { %v2029_v19 = vpop.eup %2028  ;;  %2054 = vtanh.f32 %v1518_v16  ;;  %1612 = vmatpush1.msra.mxu1 %v2027_v20 }
 0x42b   : > { %v2031_v53 = vpop.eup %2030  ;;  %2056 = vtanh.f32 %v1514_v2  ;;  %1613 = vmatprep.subr.mxu1 %v2029_v19 }
 0x42c   : > { %v2033_v1 = vpop.eup %2032  ;;  %2058 = vtanh.f32 %v1512_v3  ;;  %1614 = vmatpush1.msra.mxu1 %v2031_v53 }
 0x42d   : > { %v2035_v9 = vpop.eup %2034  ;;  %2060 = vtanh.f32 %v1508_v7  ;;  %1615 = vmatprep.subr.mxu1 %v2033_v1 }
 0x42e   : > { %v2037_v51 = vpop.eup %2036  ;;  %2062 = vtanh.f32 %v1506_v57  ;;  %1616 = vmatpush1.msra.mxu1 %v2035_v9 }
 0x42f   : > { %v2039_v62 = vpop.eup %2038  ;;  %2064 = vtanh.f32 %v1502_v8  ;;  %1617 = vmatprep.subr.mxu1 %v2037_v51 }
 0x430   : > { %v2041_v49 = vpop.eup %2040  ;;  %2066 = vtanh.f32 %v1500_v22  ;;  %1618 = vmatpush1.msra.mxu1 %v2039_v62 }
 0x431   : > { %v2043_v48 = vpop.eup %2042  ;;  %2068 = vtanh.f32 %v1496_v63  ;;  %1619 = vmatprep.subr.mxu1 %v2041_v49 }
 0x432   : > { %v2045_v6 = vpop.eup %2044  ;;  %2070 = vtanh.f32 %v1494_v59  ;;  %1620 = vmatpush1.msra.mxu1 %v2043_v48 }
 0x433   : > { %v2047_v0 = vpop.eup %2046  ;;  %2072 = vtanh.f32 %v1490_v10  ;;  %1621 = vmatprep.subr.mxu1 %v2045_v6 }
 0x434   : > { %v2049_v50 = vpop.eup %2048  ;;  %2074 = vtanh.f32 %v1488_v17  ;;  %1622 = vmatpush1.msra.mxu1 %v2047_v0 }
 0x435   : > { %v2051_v58 = vpop.eup %2050  ;;  %2076 = vtanh.f32 %v1484_v43  ;;  %1623 = vmatprep.subr.mxu1 %v2049_v50 }
 0x436   : > { %v2053_v13 = vpop.eup %2052  ;;  %2078 = vtanh.f32 %v1482_v60  ;;  %1624 = vmatpush1.msra.mxu1 %v2051_v58 }
 0x437   : > { %v2055_v5 = vpop.eup %2054  ;;  %2080 = vtanh.f32 %v1478_v47  ;;  %1625 = vmatprep.subr.mxu1 %v2053_v13 }
 0x438   : > { %v2057_v4 = vpop.eup %2056  ;;  %2082 = vtanh.f32 %v1476_v11  ;;  %1626 = vmatpush1.msra.mxu1 %v2055_v5 }
 0x439   : > { %v2059_v14 = vpop.eup %2058  ;;  %1627 = vmatprep.subr.mxu1 %v2057_v4 }
 0x43a   : > { %v2061_v24 = vpop.eup %2060  ;;  %1628 = vmatpush1.msra.mxu1 %v2059_v14 }
 0x43b   : > { %v2063_v52 = vpop.eup %2062  ;;  %1629 = vmatprep.subr.mxu1 %v2061_v24 }
 0x43c   : > { %v2065_v15 = vpop.eup %2064  ;;  %1630 = vmatpush1.msra.mxu1 %v2063_v52 }
 0x43d   : > { %v2067_v25 = vpop.eup %2066  ;;  %1631 = vmatprep.subr.mxu1 %v2065_v15 }
 0x43e   : > { %v2069_v26 = vpop.eup %2068  ;;  %1632 = vmatpush1.msra.mxu1 %v2067_v25 }
 0x43f   : > { %v2071_v27 = vpop.eup %2070  ;;  %1633 = vmatprep.subr.mxu1 %v2069_v26 }
 0x440   : > { %v2073_v28 = vpop.eup %2072  ;;  %1634 = vmatpush1.msra.mxu1 %v2071_v27 }
 0x441   : > { %v2075_v29 = vpop.eup %2074  ;;  %1635 = vmatprep.subr.mxu1 %v2073_v28 }
 0x442   : > { %v2077_v30 = vpop.eup %2076  ;;  %1636 = vmatpush1.msra.mxu1 %v2075_v29 }
 0x443   : > { %v2079_v31 = vpop.eup %2078  ;;  %1637 = vmatprep.subr.mxu1 %v2077_v30 }
 0x444   : > { %v2081_v32 = vpop.eup %2080  ;;  %1638 = vmatpush1.msra.mxu1 %v2079_v31 }
 0x445   : > { %v2083_v34 = vpop.eup %2082  ;;  %1639 = vmatprep.subr.mxu1 %v2081_v32 }
 0x446   : > { %1640 = vmatpush1.msra.mxu1 %v2083_v34 }
 0x447   : > { %1674 = vmatmul.mubr.f32.vlgmr.msra.gmra.mxu1 %v1602_v33 }
 0x507   : > { %v1675_v36 = vpop.f32.mrf.mxu1 }
 0x508   : > { %v1676_v37 = vadd.f32 %v1675_v36, %v1607_v35 }
 0x509   : > { %v1677_v38 = vpop.f32.mrf.mxu1 }
 0x50a   : > { %v1682_v39 = vmin.f32 %v1676_v37, 20.0  ;;  %v1678_v40 = vadd.f32 %v1677_v38, %v1607_v35  ;;  %vm1680_vm2 = vcmp.gt.f32.partialorder %v1676_v37, 20.0 }
 0x50c   : > { %v1684_v41 = vmul.f32 1.442695, %v1682_v39  ;;  %v1683_v42 = vmin.f32 %v1678_v40, 20.0  ;;  %vm1681_vm3 = vcmp.gt.f32.partialorder %v1678_v40, 20.0 }
 0x50e   : > { %2084 = vpow2.f32 %v1684_v41  ;;  %v1686_v44 = vmul.f32 1.442695, %v1683_v42 }
 0x510   : > { %2086 = vpow2.f32 %v1686_v44 }
 0x51b   : > { %v2085_v45 = vpop.eup %2084 }
 0x51c   : > { %v1688_v46 = vadd.f32 1.0, %v2085_v45  ;;  %v1691_v16 = vmul.f32 -0.5, %v2085_v45  ;;  %v1694_v55 = vand.u32 2147483647, %v2085_v45 }
 0x51d   : > { %v2087_v56 = vpop.eup %2086 }
 0x51e   : > { %2088 = vlog2.f32 %v1688_v46  ;;  %v1697_v54 = vadd.f32 1.0, %v2087_v56  ;;  %v1700_v61 = vmul.f32 -0.5, %v2087_v56  ;;  %v1692_v2 = vadd.f32 1.0, %v1691_v16 }
 0x51f   : > { %v1703_v7 = vand.u32 2147483647, %v2087_v56  ;;  %vm1695_vm0 = vcmp.lt.f32.partialorder %v1694_v55, 0.0004427343 }
 0x520   : > { %2090 = vlog2.f32 %v1697_v54  ;;  %v1701_v3 = vadd.f32 1.0, %v1700_v61  ;;  %v1693_v21 = vmul.f32 %v2085_v45, %v1692_v2 }
 0x521   : > { %vm1704_vm1 = vcmp.lt.f32.partialorder %v1703_v7, 0.0004427343 }
 0x522   : > { %v1702_v1 = vmul.f32 %v2087_v56, %v1701_v3 }
 0x52b   : > { %v2089_v20 = vpop.eup %2088 }
 0x52c   : > { %v1690_v19 = vmul.f32 0.6931472, %v2089_v20 }
 0x52d   : > { %v2091_v57 = vpop.eup %2090 }
 0x52e   : > { %v1696_v53 = vsel %vm1695_vm0, %v1693_v21, %v1690_v19  ;;  %v1699_v8 = vmul.f32 0.6931472, %v2091_v57 }
 0x52f   : > { %v1706_v22 = vsel %vm1680_vm2, %v1676_v37, %v1696_v53 }
 0x530   : > { %v1705_v18 = vsel %vm1704_vm1, %v1702_v1, %v1699_v8 }
 0x531   : > { %v1707_v9 = vsel %vm1681_vm3, %v1678_v40, %v1705_v18 }
 0x532   : > { %v1710_v63 = vcombine.low %v1706_v22, %v1707_v9 }
 0x534   : > { %1781 = vst.sshfl [vmem:[%s385_s12] sm:$0x33 pattern:$0x76325410] %v1710_v63 }
 0x535 PF: > { %s21_s17 = sadd.s32 1, %s2098_s17  }
 0x536   : > { %p18_p4 = scmp.ge.s32.totalorder %s21_s17, 6  }
 0x538   :  { %20 = sbr.rel (!%p18_p4) target bundleno = 1 (0x1), region = 94 }

</bundles_post_ra>
